<compile_context>
chip_gen: v6e
topology: v6e:2x2x1
jax: 0.10.0
libtpu: 0.0.40
codegen_flags: <defaults>
</compile_context>

<pallas_src>
import functools

import jax
import jax.numpy as jnp
from jax.experimental import pallas as pl
from jax.experimental.pallas import tpu as pltpu


def _round_up(x, m):
    return (x + m - 1) // m * m


def _pad2d(a, rows, cols):
    pr, pc = rows - a.shape[0], cols - a.shape[1]
    if pr or pc:
        a = jnp.pad(a, ((0, pr), (0, pc)))
    return a


def _vmem_limit_bytes(est):
    """Chip-aware VMEM cap: physical capacity minus headroom for compiler
    internal scratch / semaphores (~56 MiB on v7x, ~120 MiB on v5e/v6e)."""
    try:
        cap = int(pltpu.get_tpu_info().vmem_capacity_bytes)
    except Exception:  # non-TPU backend / older runtime: conservative fallback
        cap = 64 * 1024 * 1024
    ceiling = max(cap - 8 * 1024 * 1024, 32 * 1024 * 1024)
    return int(min(max(est, 32 * 1024 * 1024), ceiling))


def _skipgram_kernel(x_ref, w1_ref, b1_ref, w2_ref, b2_ref, out_ref, h_ref):
    j = pl.program_id(0)  # output-column tile (outer, sequential)
    i = pl.program_id(1)  # batch row tile (inner)

    # First linear: runs exactly once per row tile, during the first column
    # sweep (j == 0).  The f32 hidden activations for the whole padded batch
    # stay resident in VMEM scratch and are reused by every later column tile,
    # so x / W1 are never re-read and the first matmul is never recomputed.
    # NOTE: this relies on the column axis being the OUTER, sequentially
    # executed ("arbitrary") grid axis — do not reorder the grid.
    @pl.when(j == 0)
    def _():
        h = jnp.dot(x_ref[...], w1_ref[...], preferred_element_type=jnp.float32)
        h_ref[i] = h + b1_ref[...].astype(jnp.float32)

    # Second linear: feed the MXU in W2's native dtype (bf16 x bf16 when the
    # inputs are bf16 -> native MXU rate) with f32 accumulation; bias + cast
    # epilogue on a lane-dense (TM, TN) output tile.
    h = h_ref[i].astype(w2_ref.dtype)
    acc = jnp.dot(h, w2_ref[...], preferred_element_type=jnp.float32)
    out_ref[...] = (acc + b2_ref[...].astype(jnp.float32)).astype(out_ref.dtype)


@functools.partial(jax.jit, static_argnames=("tm", "tn", "compute_dtype"))
def skipgram_forward(x, w1_t, b1, w2_t, b2, *, tm=None, tn=None,
                     compute_dtype=None):
    """x: [B, nodeNum]; w1_t: [nodeNum, emb]; b1: [*, emb];
       w2_t: [emb, nodeNum]; b2: [*, nodeNum]  ->  [B, nodeNum]"""
    B, K = x.shape
    E = w1_t.shape[1]
    N = w2_t.shape[1]
    out_dtype = x.dtype

    if compute_dtype is not None:
        # v5e note: the MXU is bf16-native; casting f32 operands to bf16 here
        # (accumulation stays f32 inside the kernel) recovers the native
        # matmul rate at a small accuracy cost.  Output stays in x's dtype.
        x = x.astype(compute_dtype)
        w1_t = w1_t.astype(compute_dtype)
        w2_t = w2_t.astype(compute_dtype)

    # Pad to vreg/MXU friendly multiples (lane = 128).
    Kp = _round_up(K, 128)
    Ep = _round_up(E, 128)
    TM = tm if tm is not None else min(256, _round_up(B, 128))
    TN = tn if tn is not None else min(512, _round_up(N, 128))
    Bp = _round_up(B, TM)
    Np = _round_up(N, TN)

    xp = _pad2d(x, Bp, Kp)
    w1p = _pad2d(w1_t, Kp, Ep)
    b1p = _pad2d(b1.reshape(1, -1).astype(jnp.float32), 1, Ep)
    w2p = _pad2d(w2_t, Ep, Np)
    b2p = _pad2d(b2.reshape(1, -1).astype(jnp.float32), 1, Np)

    n_row_tiles = Bp // TM
    n_col_tiles = Np // TN

    grid_spec = pltpu.PrefetchScalarGridSpec(
        num_scalar_prefetch=0,
        # Column tiles OUTER so each W2 column tile is fetched exactly once
        # per launch; row tiles INNER reuse the resident full-batch hidden
        # scratch computed during the first column sweep.
        grid=(n_col_tiles, n_row_tiles),
        in_specs=[
            # x row-slab: streamed only during the first column sweep; for
            # j > 0 the block index pins to row-tile 0 (the tile is unread by
            # the kernel then anyway), so x costs ~one pass of HBM traffic.
            pl.BlockSpec((TM, Kp), lambda j, i: (jnp.where(j == 0, i, 0), 0)),
            # W1 / b1: weight-stationary, constant block index -> DMA'd once.
            pl.BlockSpec((Kp, Ep), lambda j, i: (0, 0)),
            pl.BlockSpec((1, Ep), lambda j, i: (0, 0)),
            # W2 / b2: lane-dense column tiles; index changes only with j, so
            # each tile is DMA'd exactly once per launch.
            pl.BlockSpec((Ep, TN), lambda j, i: (0, j)),
            pl.BlockSpec((1, TN), lambda j, i: (0, j)),
        ],
        out_specs=pl.BlockSpec((TM, TN), lambda j, i: (i, j)),
        # Full-batch f32 hidden activations, indexed by the inner row tile.
        scratch_shapes=[pltpu.VMEM((n_row_tiles, TM, Ep), jnp.float32)],
    )

    in_itemsize = jnp.dtype(x.dtype).itemsize
    out_itemsize = jnp.dtype(out_dtype).itemsize
    # Rough resident VMEM footprint (double-buffered streams + scratch).
    vmem_est = (2 * TM * Kp * in_itemsize                # x row tiles
                + 2 * Kp * Ep * in_itemsize              # W1
                + 2 * Ep * 4                             # b1
                + 2 * (Ep * TN * in_itemsize + TN * 4)   # W2 / b2 tiles
                + 2 * TM * TN * out_itemsize             # output tiles
                + Bp * Ep * 4                            # hidden scratch
                + (2 << 20))                             # headroom

    cost = pl.CostEstimate(
        flops=2 * Bp * Kp * Ep + 2 * Bp * Ep * Np,
        transcendentals=0,
        bytes_accessed=int(
            xp.size * in_itemsize + w1p.size * in_itemsize + b1p.size * 4
            + w2p.size * in_itemsize + b2p.size * 4
            + Bp * Np * out_itemsize),
    )

    out_padded = pl.pallas_call(
        _skipgram_kernel,
        out_shape=jax.ShapeDtypeStruct((Bp, Np), out_dtype),
        grid_spec=grid_spec,
        compiler_params=pltpu.CompilerParams(
            # Both axes sequential: the j==0-guarded hidden compute requires
            # the column axis to execute in order on one core, and the shared
            # hidden scratch / program_id contract must hold; measured cost of
            # "arbitrary" vs "parallel" is ~0.
            dimension_semantics=("arbitrary", "arbitrary"),
            vmem_limit_bytes=_vmem_limit_bytes(vmem_est),
        ),
        cost_estimate=cost,
    )(xp, w1p, b1p, w2p, b2p)
    return out_padded[:B, :N]


def init_skipgram_params(key, node_num, embedding_size, dtype=jnp.float32):
    """Mimics nn.Linear's U(-1/sqrt(fan_in), 1/sqrt(fan_in)); weights stored
    transposed relative to PyTorch: [in_features, out_features]."""
    k1, k2, k3, k4 = jax.random.split(key, 4)
    bound1 = 1.0 / float(node_num) ** 0.5
    bound2 = 1.0 / float(embedding_size) ** 0.5
    w1_t = jax.random.uniform(k1, (node_num, embedding_size), dtype, -bound1, bound1)
    b1 = jax.random.uniform(k2, (1, embedding_size), jnp.float32, -bound1, bound1)
    w2_t = jax.random.uniform(k3, (embedding_size, node_num), dtype, -bound2, bound2)
    b2 = jax.random.uniform(k4, (1, node_num), jnp.float32, -bound2, bound2)
    return w1_t, b1, w2_t, b2


if __name__ == "__main__":
    key = jax.random.PRNGKey(0)
    kx, kp, kx2, kp2 = jax.random.split(key, 4)

    # --- Test 1: tile-friendly f32, multi-tile grid (2 col x 2 row) ---------
    node_num, emb, batch = 512, 128, 256
    x = jax.random.normal(kx, (batch, node_num), jnp.float32)
    w1_t, b1, w2_t, b2 = init_skipgram_params(kp, node_num, emb)
    out = jax.block_until_ready(
        skipgram_forward(x, w1_t, b1, w2_t, b2, tm=128, tn=256))
    ref = (x @ w1_t + b1) @ w2_t + b2
    assert out.shape == (batch, node_num)
    assert jnp.allclose(out, ref, atol=2e-3, rtol=2e-3), \
        float(jnp.max(jnp.abs(out - ref)))

    # --- Test 2: ragged shapes exercise the padding path --------------------
    n2, e2, b2_sz = 300, 96, 100
    x2 = jax.random.normal(kx2, (b2_sz, n2), jnp.float32)
    w1b_, b1b_, w2b_, b2b_ = init_skipgram_params(kp2, n2, e2)
    out2 = jax.block_until_ready(skipgram_forward(x2, w1b_, b1b_, w2b_, b2b_))
    ref2 = (x2 @ w1b_ + b1b_) @ w2b_ + b2b_
    assert out2.shape == (b2_sz, n2)
    assert jnp.allclose(out2, ref2, atol=2e-3, rtol=2e-3), \
        float(jnp.max(jnp.abs(out2 - ref2)))

    # --- Test 3: bf16 inputs, native-dtype MXU, f32 accumulation ------------
    xb = x.astype(jnp.bfloat16)
    w1b = w1_t.astype(jnp.bfloat16)
    w2b = w2_t.astype(jnp.bfloat16)
    outb = jax.block_until_ready(
        skipgram_forward(xb, w1b, b1, w2b, b2, tm=128, tn=256))
    refb = ((xb.astype(jnp.float32) @ w1b.astype(jnp.float32) + b1)
            @ w2b.astype(jnp.float32) + b2).astype(jnp.bfloat16)
    assert outb.dtype == jnp.bfloat16 and outb.shape == (batch, node_num)
    assert jnp.allclose(outb.astype(jnp.float32), refb.astype(jnp.float32),
                        atol=5e-2, rtol=5e-2), \
        float(jnp.max(jnp.abs(outb.astype(jnp.float32) - refb.astype(jnp.float32))))

    # --- Test 4: f32 inputs, bf16 compute path (v5e-friendly option) --------
    outc = jax.block_until_ready(
        skipgram_forward(x, w1_t, b1, w2_t, b2, tm=128, tn=256,
                         compute_dtype=jnp.bfloat16))
    assert outc.dtype == jnp.float32 and outc.shape == (batch, node_num)
    assert jnp.allclose(outc, ref, atol=5e-2, rtol=5e-2), \
        float(jnp.max(jnp.abs(outc - ref)))

    print("KERNEL_OK")
</pallas_src>

<mosaic_0001>
module attributes {stable_mosaic.version = 11 : i64} {
  func.func @_skipgram_kernel(%arg0: i32, %arg1: i32, %arg2: memref<128x512xf32, #tpu.memory_space<vmem>>, %arg3: memref<512x128xf32, #tpu.memory_space<vmem>>, %arg4: memref<1x128xf32, #tpu.memory_space<vmem>>, %arg5: memref<128x256xf32, #tpu.memory_space<vmem>>, %arg6: memref<1x256xf32, #tpu.memory_space<vmem>>, %arg7: memref<128x256xf32, #tpu.memory_space<vmem>>, %arg8: memref<2x128x128xf32, #tpu.memory_space<vmem>>) attributes {dimension_semantics = [#tpu.dimension_semantics<arbitrary>, #tpu.dimension_semantics<arbitrary>], iteration_bounds = array<i64: 2, 2>, scalar_prefetch = 0 : i64, scratch_operands = 1 : i64, tpu.core_type = #tpu.core_type<tc>, window_params = [{transform_indices = @transform_0, window_bounds = array<i64: 128, 512>}, {pipeline_mode = #tpu.pipeline_mode<synchronous>, transform_indices = @transform_1, window_bounds = array<i64: 512, 128>}, {pipeline_mode = #tpu.pipeline_mode<synchronous>, transform_indices = @transform_2, window_bounds = array<i64: 1, 128>}, {transform_indices = @transform_3, window_bounds = array<i64: 128, 256>}, {transform_indices = @transform_4, window_bounds = array<i64: 1, 256>}, {transform_indices = @transform_5, window_bounds = array<i64: 128, 256>}]} {
    %c0_i32 = arith.constant 0 : i32
    %0 = arith.cmpi eq, %arg0, %c0_i32 : i32
    %1 = arith.extui %0 : i1 to i32
    %c0_i32_0 = arith.constant 0 : i32
    %2 = arith.cmpi ne, %1, %c0_i32_0 : i32
    scf.if %2 {
      %c0_8 = arith.constant 0 : index
      %c0_9 = arith.constant 0 : index
      %12 = vector.load %arg2[%c0_8, %c0_9] : memref<128x512xf32, #tpu.memory_space<vmem>>, vector<128x512xf32>
      %c0_10 = arith.constant 0 : index
      %c0_11 = arith.constant 0 : index
      %13 = vector.load %arg3[%c0_10, %c0_11] : memref<512x128xf32, #tpu.memory_space<vmem>>, vector<512x128xf32>
      %cst_12 = arith.constant dense<0.000000e+00> : vector<128x128xf32>
      %14 = tpu.matmul %12, %13, %cst_12 {dimension_numbers = #tpu.dot_dimension_numbers<[1], [0], [0], [1], [0, 0, 1, 1], [], []>} : vector<128x512xf32>, vector<512x128xf32>, vector<128x128xf32> -> vector<128x128xf32>
      %c0_13 = arith.constant 0 : index
      %c0_14 = arith.constant 0 : index
      %15 = vector.load %arg4[%c0_13, %c0_14] : memref<1x128xf32, #tpu.memory_space<vmem>>, vector<1x128xf32>
      %16 = vector.broadcast %15 : vector<1x128xf32> to vector<128x128xf32>
      %17 = arith.addf %14, %16 : vector<128x128xf32>
      %18 = arith.index_cast %arg1 : i32 to index
      %c0_15 = arith.constant 0 : index
      %c0_16 = arith.constant 0 : index
      %19 = vector.load %arg8[%18, %c0_15, %c0_16] : memref<2x128x128xf32, #tpu.memory_space<vmem>>, vector<1x128x128xf32>
      %20 = vector.shape_cast %19 : vector<1x128x128xf32> to vector<128x128xf32>
      %21 = vector.shape_cast %17 : vector<128x128xf32> to vector<1x128x128xf32>
      tpu.vector_store %arg8[%18, %c0_15, %c0_16], %21 {strides = array<i32>} : memref<2x128x128xf32, #tpu.memory_space<vmem>>, vector<1x128x128xf32>,
    } else {
    }
    %3 = arith.index_cast %arg1 : i32 to index
    %c0 = arith.constant 0 : index
    %c0_1 = arith.constant 0 : index
    %4 = vector.load %arg8[%3, %c0, %c0_1] : memref<2x128x128xf32, #tpu.memory_space<vmem>>, vector<1x128x128xf32>
    %5 = vector.shape_cast %4 : vector<1x128x128xf32> to vector<128x128xf32>
    %c0_2 = arith.constant 0 : index
    %c0_3 = arith.constant 0 : index
    %6 = vector.load %arg5[%c0_2, %c0_3] : memref<128x256xf32, #tpu.memory_space<vmem>>, vector<128x256xf32>
    %cst = arith.constant dense<0.000000e+00> : vector<128x256xf32>
    %7 = tpu.matmul %5, %6, %cst {dimension_numbers = #tpu.dot_dimension_numbers<[1], [0], [0], [1], [0, 0, 1, 1], [], []>} : vector<128x128xf32>, vector<128x256xf32>, vector<128x256xf32> -> vector<128x256xf32>
    %c0_4 = arith.constant 0 : index
    %c0_5 = arith.constant 0 : index
    %8 = vector.load %arg6[%c0_4, %c0_5] : memref<1x256xf32, #tpu.memory_space<vmem>>, vector<1x256xf32>
    %9 = vector.broadcast %8 : vector<1x256xf32> to vector<128x256xf32>
    %10 = arith.addf %7, %9 : vector<128x256xf32>
    %c0_6 = arith.constant 0 : index
    %c0_7 = arith.constant 0 : index
    %11 = vector.load %arg7[%c0_6, %c0_7] : memref<128x256xf32, #tpu.memory_space<vmem>>, vector<128x256xf32>
    tpu.vector_store %arg7[%c0_6, %c0_7], %10 {strides = array<i32>} : memref<128x256xf32, #tpu.memory_space<vmem>>, vector<128x256xf32>,
    return
  }
  func.func @transform_0(%arg0: i32, %arg1: i32) -> (i32, i32) {
    %c0_i32 = arith.constant 0 : i32
    %0 = arith.cmpi eq, %arg0, %c0_i32 : i32
    %c0_i32_0 = arith.constant 0 : i32
    %1 = arith.select %0, %arg1, %c0_i32_0 : i32
    %c0_i32_1 = arith.constant 0 : i32
    %c0_i32_2 = arith.constant 0 : i32
    return %1, %c0_i32_1 : i32, i32
  }
  func.func @transform_1(%arg0: i32, %arg1: i32) -> (i32, i32) {
    %c0_i32 = arith.constant 0 : i32
    %c0_i32_0 = arith.constant 0 : i32
    %c0_i32_1 = arith.constant 0 : i32
    return %c0_i32, %c0_i32_0 : i32, i32
  }
  func.func @transform_2(%arg0: i32, %arg1: i32) -> (i32, i32) {
    %c0_i32 = arith.constant 0 : i32
    %c0_i32_0 = arith.constant 0 : i32
    %c0_i32_1 = arith.constant 0 : i32
    return %c0_i32, %c0_i32_0 : i32, i32
  }
  func.func @transform_3(%arg0: i32, %arg1: i32) -> (i32, i32) {
    %c0_i32 = arith.constant 0 : i32
    %c0_i32_0 = arith.constant 0 : i32
    return %c0_i32, %arg0 : i32, i32
  }
  func.func @transform_4(%arg0: i32, %arg1: i32) -> (i32, i32) {
    %c0_i32 = arith.constant 0 : i32
    %c0_i32_0 = arith.constant 0 : i32
    return %c0_i32, %arg0 : i32, i32
  }
  func.func @transform_5(%arg0: i32, %arg1: i32) -> (i32, i32) {
    %c0_i32 = arith.constant 0 : i32
    return %arg1, %arg0 : i32, i32
  }
}

</mosaic_0001>

<bundles_post_ra>
// kernel: skipgram_forward.1
= control target key start
LH: loop header
LB: loop body
LE: loop exit
PB: predicated region body
PF: predicated region fallthrough
CT: control target
= control target key end

     0   :  { %s2417_s0 = inlined_call_operand.hbm [shape: f32[256,512], index: 0, kind: input, shape index: {}]   ;;  %s2418_s1 = inlined_call_operand.hbm [shape: f32[512,128], index: 1, kind: input, shape index: {}]   ;;  %s2419_s2 = inlined_call_operand.vmem [shape: f32[1,128], index: 2, kind: input, shape index: {}]   ;;  %s2420_s3 = inlined_call_operand.hbm [shape: f32[128,512], index: 3, kind: input, shape index: {}]   ;;  %s2421_s4 = inlined_call_operand.vmem [shape: f32[1,512], index: 4, kind: input, shape index: {}]   ;;  %s2422_s5 = inlined_call_operand.hbm [shape: f32[256,512], index: 5, kind: output, shape index: {}]  }
   0x1   :  { %2437 = sst [smem:[#allocation26_spill]] %s2417_s0 }
   0x2   :  { %2438 = sst [smem:[#allocation27_spill]] %s2418_s1 }
   0x3   :  { %2439 = sst [smem:[#allocation28_spill]] %s2419_s2 }
   0x4   :  { %2440 = sst [smem:[#allocation29_spill]] %s2420_s3 }
   0x5   :  { %2441 = sst [smem:[#allocation30_spill]] %s2421_s4 }
   0x6   :  { %2442 = sst [smem:[#allocation31_spill]] %s2422_s5 }
   0x7   :  { %10 = vsyncpa [#allocation4], 0 }
   0x8   :  { %12 = vsyncpa [#allocation4 + $0x1], 0 }
   0x9   :  { %13 = vsyncpa [#allocation7], 0 }
   0xa   :  { %14 = vsyncpa [#allocation5], 0 }
   0xb   :  { %16 = vsyncpa [#allocation5 + $0x1], 0  ;;  %s1847_s18 = smov 0   ;;  %s1849_s19 = smov 0  }
   0xc   :  { %s1851_s20 = smov 0   ;;  %s1853_s21 = smov 0  }
   0xd   :  { %s1855_s22 = smov 0   ;;  %s1857_s23 = smov 0  }
   0xe   :  { %s1859_s24 = smov 0   ;;  %s1861_s25 = smov 0  }
   0xf   :  { %s1863_s26 = smov 0   ;;  %s1865_s27 = smov 0  }
  0x10   :  { %s1867_s28 = smov 0   ;;  %s1869_s29 = smov 0  }
  0x11   :  { %s1871_s30 = smov 0   ;;  %s1873_s6 = smov 0  }
  0x12 LB: > { %2443 = sst [smem:[#allocation14_spill]] %s1757_s20  ;;  %s31_s7 = sadd.s32 1, %s1793_s29  ;;  %s1801_s6 = sphi %s1873_s6, %s22_s6   ;;  %s1797_s30 = sphi %s1871_s30, %s2499_s30   ;;  %s1793_s29 = sphi %s1869_s29, %s2490_s29   ;;  %s1789_s28 = sphi %s1867_s28, %s2498_s28   ;;  %s1785_s27 = sphi %s1865_s27, %s2489_s27   ;;  %s1781_s26 = sphi %s1863_s26, %s2488_s26   ;;  %s1777_s25 = sphi %s1861_s25, %s2497_s25   ;;  %s1773_s24 = sphi %s1859_s24, %s2496_s24   ;;  %s1769_s23 = sphi %s1857_s23, %s2486_s23   ;;  %s1765_s22 = sphi %s1855_s22, %s2495_s22   ;;  %s1761_s21 = sphi %s1853_s21, %s2494_s21   ;;  %s1757_s20 = sphi %s1851_s20, %s2484_s20   ;;  %s1753_s19 = sphi %s1849_s19, %s2493_s19   ;;  %s1749_s18 = sphi %s1847_s18, %s2492_s18  }
  0x13   : > { %2444 = sst [smem:[#allocation15_spill]] %s1769_s23  ;;  %s34_s8 = sadd.s32 1, %s1797_s30 }
  0x14   : > { %2445 = sst [smem:[#allocation16_spill]] %s1781_s26  ;;  %p32_p0 = scmp.ge.s32.totalorder %s31_s7, 2 }
  0x15   : > { %2446 = sst [smem:[#allocation17_spill]] %s1785_s27  ;;  %p38_p1 = scmp.eq.s32.totalorder %s1797_s30, 0 }
  0x16   : > { %2447 = sst [smem:[#allocation18_spill]] %s1789_s28  ;;  %s45_s9 = sadd.s32 1, %s1781_s26 }
  0x17   : > { %2448 = sst [smem:[#allocation19_spill]] %s1793_s29  ;;  %p52_p2 = scmp.ne.s32.totalorder %s1781_s26, %s1777_s25 }
  0x18   : > { %s2501_s7 = smov (%p32_p0, %s31_s7), 0  ;;  %s2503_s8 = smov (!%p32_p0, %s34_s8), %s1797_s30 }
  0x19   : > { %2449 = sst [smem:[#allocation20_spill]] %s2501_s7  ;;  %p36_p3 = scmp.ge.s32.totalorder %s2503_s8, 2 }
  0x1a   : > { %s39_s10 = scalar_select %p38_p1, %s1793_s29, 0 }
  0x1b   : > { %p53_p4 = scmp.eq.s32.totalorder %s1801_s6, 0  ;;  %s162_s11 = ssub.s32 %s1793_s29, %s2501_s7 }
  0x1c   : > { %s167_s12 = sadd.s32 1, %s1757_s20  ;;  %s2505_s8 = smov (%p36_p3, %s2503_s8), 0 }
  0x1d   : > { %2450 = sst [smem:[#allocation21_spill]] %s2505_s8  ;;  %p1935_p5 = por %p53_p4, %p52_p2 }
  0x1e   : > { %p40_p6 = scmp.eq.s32.totalorder %s2505_s8, 0  ;;  %s1942_s14 = ssub.s32 %s1797_s30, %s2505_s8 }
  0x1f   : > { %p111_p7 = scmp.eq.s32.totalorder %s1942_s14, 0  ;;  %s164_s15 = sor.u32 %s162_s11, %s1942_s14 }
  0x20   : > { %s41_s16 = scalar_select %p40_p6, %s2501_s7, 0 }
  0x21   : > { %p165_p8 = scmp.eq.s32.totalorder %s164_s15, 0  ;;  %p2428_p9 = scmp.lt.s32.totalorder %s1801_s6, 4 }
  0x22   : > { %s42_s17 = ssub.s32 %s39_s10, %s41_s16  ;;  %s220_s29 = sand.u32 1, %s1801_s6  }
  0x23   : > { %p43_p10 = scmp.eq.s32.totalorder %s42_s17, 0  ;;  %s222_s27 = sand.u32 1, %s1781_s26  }
  0x24   : > { %s1950_s5 = scalar_select %p165_p8, %s1757_s20, %s167_s12  }
  0x25   : > { %s1953_s2 = scalar_select %p43_p10, %s1781_s26, %s45_s9  }
  0x26   : > { %2452 = sst [smem:[#allocation22_spill]] %s1950_s5  ;;  %s1220_s4 = sshll.u32 %s39_s10, 13 }
  0x27   : > { %2453 = sst [smem:[#allocation23_spill]] %s1953_s2  ;;  %s1195_s28 = sshll.u32 %s222_s27, 9 }
  0x28   : > { %s2454_s0 = sld [smem:[#allocation26_spill]]  ;;  %p1963_p11 = pnand %p2428_p9, %p1935_p5 }
  0x29   : > { %s224_s15 = scalar_lea.vmem [#allocation3], %s1195_s28  ;;  %s1967_s12 = scalar_lea.sflag [#allocation4], %s220_s29 }
  0x2a   : > { %s234_s16 = sshll.u32 %s224_s15, 4  ;;  %p1569_p12 = pneg %p1963_p11  ;;  %s235_s16 = int_to_ptr.vmem [resolvable:$true] %s234_s16 }
  0x2b   : > { %s1580_s9 = scalar_lea.vmem %s235_s16, 8192  ;;  %s1803_s3 = smov [#allocation3]  }
  0x2c   : > { %p1581_p13 = scmp.ne.s32.totalorder %s235_s16, %s1580_s9 }
  0x2e   : > { %s233_s1 = scalar_lea.hbm %s2454_s0, %s1220_s4  ;;  %p1583_p0 = pnand %p1581_p13, %p1569_p12 }
  0x2f   : > { %s1585_s4 = sshll.u32 %s1803_s3, 4  ;;  %s1586_s4 = int_to_ptr.vmem [resolvable:$false] %s1585_s4 }
  0x30   : > { %p1584_p1 = pneg %p1583_p0  ;;  %s1587_s27 = scalar_lea.vmem %s1586_s4, 16384 }
  0x31   : > { %p1588_p2 = scmp.lt.s32.totalorder %s235_s16, %s1586_s4  ;;  %p1589_p3 = scmp.lt.s32.totalorder %s1587_s27, %s1580_s9 }
  0x33   : > { %p1590_p5 = por %p1589_p3, %p1588_p2 }
  0x35   : > { %p1591_p6 = pnand %p1590_p5, %p1584_p1 }
  0x37   : > { %1594 = shalt.err (!%p1591_p6)
}
  0x38   : > { %s2431_s28 = smov 512   ;;  %s1805_s29 = smov 32  }
  0x39   : > { %1432 = dma.hbm_to_vmem [thread:$0]  (!%p1963_p11), %s233_s1, 8192, %s235_s16, %s1967_s12, %s2431_s28, %s2431_s28, %s1805_s29  }
  0x3a   : > { %s1977_s8 = sadd.s32 4294967295, %s1801_s6   ;;  %s1191_s10 = sadd.s32 4294967294, %s1801_s6  }
  0x3b   : > { %p58_p8 = scmp.ne.s32.totalorder %s1777_s25, %s1773_s24  ;;  %p59_p10 = scmp.eq.s32.totalorder %s1977_s8, 0 }
  0x3c   : > { %s113_s13 = sadd.s32 1, %s1769_s23  ;;  %p120_p11 = scmp.ne.s32.totalorder %s1769_s23, %s1765_s22 }
  0x3d   : > { %s1987_s17 = scalar_select %p111_p7, %s1769_s23, %s113_s13  }
  0x3e   : > { %p1991_p12 = por %p59_p10, %p58_p8  ;;  %p126_p13 = scmp.ne.s32.totalorder %s1765_s22, %s1761_s21 }
  0x3f   : > { %2456 = sst [smem:[#allocation24_spill]] %s1987_s17  ;;  %p177_p0 = scmp.ne.s32.totalorder %s1757_s20, %s1753_s19 }
  0x40   : > { %p2003_p1 = por %p120_p11, %p53_p4  ;;  %p178_p2 = scmp.eq.s32.totalorder %s1977_s8, 3 }
  0x41   : > { %p2010_p7 = por %p126_p13, %p59_p10  ;;  %p183_p3 = scmp.ne.s32.totalorder %s1753_s19, %s1749_s18 }
  0x42   : > { %p2016_p5 = por %p178_p2, %p177_p0  ;;  %p184_p6 = scmp.eq.s32.totalorder %s1191_s10, 3 }
  0x43   : > { %s2459_s24 = scalar_select %p2010_p7, 1, 0 }
  0x44   : > { %s2460_s14 = scalar_select %p2016_p5, 1, 0 }
  0x45   : > { %p1192_p8 = scmp.ge.s32.totalorder %s1801_s6, 1  ;;  %p191_p9 = scmp.lt.s32.totalorder %s1801_s6, 5 }
  0x46   : > { %p2022_p4 = por %p184_p6, %p183_p3  ;;  %s1806_s16 = smov [#allocation6]  }
  0x47   : > { %p2026_p11 = pnand %p1192_p8, %p191_p9  ;;  %s203_s9 = sshll.u32 %s1806_s16, 4  ;;  %s204_s9 = int_to_ptr.vmem [resolvable:$true] %s203_s9 }
  0x48   : > { %s2461_s21 = scalar_select %p2022_p4, 1, 0 }
  0x49   : > { %p1425_p13 = pneg %p2026_p11  ;;  %p2464_p0 = scmp.lt.s32.totalorder %s1801_s6, 4 }
  0x4a   : > { %2462 = sst [smem:[#allocation25_spill]] %s2461_s21  ;;  %s246_s27 = sand.u32 1, %s1769_s23  }
  0x4b   : > { %p2036_p2 = pnand %p2464_p0, %p2003_p1  ;;  %p2042_p3 = pnand %p1425_p13, %p59_p10 }
  0x4c   : > { %s1199_s29 = sshll.u32 %s246_s27, 8  ;;  %s1606_s10 = scalar_lea.vmem %s204_s9, 8192 }
  0x4d   : > { %p1597_p9 = pneg %p2042_p3  ;;  %p1607_p6 = scmp.ne.s32.totalorder %s204_s9, %s1606_s10 }
  0x4e   : > { %p1614_p5 = scmp.lt.s32.totalorder %s204_s9, %s204_s9  ;;  %p1615_p7 = scmp.lt.s32.totalorder %s1606_s10, %s1606_s10 }
  0x4f   : > { %p1609_p8 = pnand %p1607_p6, %p1597_p9 }
  0x50   : > { %p1616_p1 = por %p1615_p7, %p1614_p5 }
  0x51   : > { %p1610_p4 = pneg %p1609_p8 }
  0x53   : > { %p1617_p0 = pnand %p1616_p1, %p1610_p4 }
  0x55   : > { %1620 = shalt.err (!%p1617_p0)
}
  0x56   : > { %s1807_s13 = smov 128   ;;  %s1808_s1 = smov 8  }
  0x57   : > { %s2467_s27 = sld [smem:[#allocation27_spill]]  ;;  %s1221_s0 = sshll.u32 %s1797_s30, 8 }
  0x58   : > { %s248_s7 = scalar_lea.vmem [#allocation8], %s1199_s29  ;;  %s2468_s23 = sld [smem:[#allocation29_spill]] }
  0x59   : > { %s255_s2 = sshll.u32 %s248_s7, 4  ;;  %p1623_p7 = pneg %p2036_p2  ;;  %s256_s2 = int_to_ptr.vmem [resolvable:$true] %s255_s2 }
  0x5a   : > { %s1634_s5 = scalar_lea.vmem %s256_s2, 4096  ;;  %s1809_s20 = smov [#allocation8]  }
  0x5b   : > { %p1635_p5 = scmp.ne.s32.totalorder %s256_s2, %s1634_s5  ;;  %s1639_s4 = sshll.u32 %s1809_s20, 4  ;;  %s1640_s4 = int_to_ptr.vmem [resolvable:$false] %s1639_s4 }
  0x5c   : > { %s1641_s21 = scalar_lea.vmem %s1640_s4, 8192  ;;  %p1642_p9 = scmp.lt.s32.totalorder %s256_s2, %s1640_s4 }
  0x5d   : > { %1428 = dma.hbm_to_vmem [thread:$0]  (!%p2042_p3), %s2467_s27, 8192, %s204_s9, [#allocation7], %s1807_s13, %s1807_s13, %s1808_s1  }
  0x5e   : > { %s254_s10 = scalar_lea.hbm %s2468_s23, %s1221_s0  ;;  %p1637_p4 = pnand %p1635_p5, %p1623_p7 }
  0x5f   : > { %p1643_p3 = scmp.lt.s32.totalorder %s1641_s21, %s1634_s5 }
  0x60   : > { %p1638_p13 = pneg %p1637_p4 }
  0x61   : > { %p1644_p6 = por %p1643_p3, %p1642_p9 }
  0x63   : > { %p1645_p8 = pnand %p1644_p6, %p1638_p13 }
  0x65   : > { %1648 = shalt.err (!%p1645_p8)
}
  0x66   : > { %s1810_s7 = smov 256   ;;  %s1811_s0 = smov 16  }
  0x67   : > { %s2469_s23 = smov 512   ;;  %275 = sbr.rel (%p2026_p11) target bundleno = 699 (0x2bb), region = 40 }
  0x68   : > { %1435 = dma.hbm_to_vmem [thread:$0]  (!%p2036_p2), %s254_s10, 4096, %s256_s2, %s1967_s12, %s2469_s23, %s1810_s7, %s1811_s0  }
  0x69   : > { %s277_s20 = sand.u32 (!%p2026_p11), 1, %s1977_s8   ;;  %s279_s26 = sand.u32 (!%p2026_p11), 1, %s1777_s25  }
  0x6a   : > { %s1203_s28 = sshll.u32 (!%p2026_p11), %s279_s26, 9  ;;  %s278_s5 = scalar_lea.sflag (!%p2026_p11), [#allocation4], %s277_s20 }
  0x6b   : > { %s2068_s17 = scalar_lea.vmem (!%p2026_p11), [#allocation3], %s1203_s28 }
  0x6c   : > { %1732 = dma.done.wait (%p1991_p12), %s278_s5, 8192  }
  0x6d   : > { %1734 = vsyncadd (%p1991_p12), %s278_s5, 4294959104 }
  0x6e   : > { %1736 = dma.done.wait (%p59_p10), [#allocation7], 8192  }
  0x6f   : > { %1738 = vsyncadd (%p59_p10), [#allocation7], 4294959104  ;;  %s292_s2 = sand.u32 1, %s1765_s22   ;;  %p2470_p11 = scmp.ne.s32.totalorder %s2459_s24, 0 }
  0x70   : > { %s1205_s12 = sshll.u32 %s292_s2, 8 }
  0x71   : > { %s2079_s21 = scalar_lea.vmem [#allocation8], %s1205_s12 }
  0x72   : > { %1740 = dma.done.wait (%p2470_p11), %s278_s5, 4096  }
  0x73   : > { %1742 = vsyncadd (%p2470_p11), %s278_s5, 4294963200  ;;  %s2471_s11 = sld [smem:[#allocation18_spill]]  ;;  %s327_s15 = sand.u32 1, %s1753_s19  }
  0x74   : > { %s1206_s8 = sshll.u32 %s327_s15, 8  ;;  %s2472_s1 = sld [smem:[#allocation30_spill]] }
  0x75   : > { %s2099_s24 = scalar_lea.vmem [#allocation9], %s1206_s8 }
  0x79   : > { %s2087_s9 = sshll.u32 %s2471_s11, 1  ;;  %p1208_p12 = scmp.ne.s32.totalorder %s2471_s11, 0 }
  0x7a   : > { %p335_p10 = scmp.lt.s32.totalorder %s2087_s9, 3  ;;  %s2473_s27 = sld [smem:[#allocation17_spill]] (!%p1208_p12) }
  0x7b   : > { %344 = sbr.rel (%p1208_p12) target bundleno = 425 (0x1a9), region = 56  ;;  %s2474_s7 = sld [smem:[#allocation28_spill]] (!%p1208_p12) }
  0x7c   : > { %s2093_s3 = scalar_select %p335_p10, %s2087_s9, 3 }
  0x7e   : > { %s337_s16 = scalar_lea.vmem %s2472_s1, %s2093_s3 }
  0x80   : > { %v440_v0 = vld [vmem:[#allocation6 + $0xf8] sm:$0xff]  ;;  %v439_v4 = vld [vmem:[#allocation6 + $0xf0] sm:$0xff]  ;;  %v438_v8 = vld [vmem:[#allocation6 + $0xe8] sm:$0xff]  ;;  %s1210_s0 = sshll.u32 %s2473_s27, 7 }
  0x81   : > { %v472_v1 = vld [vmem:[#allocation6 + $0x1f8] sm:$0xff]  ;;  %1223 = vmatprep.subr.mxu0 %v440_v0  ;;  %v471_v5 = vld [vmem:[#allocation6 + $0x1f0] sm:$0xff]  ;;  %v470_v9 = vld [vmem:[#allocation6 + $0x1e8] sm:$0xff]  ;;  %s2173_s23 = scalar_lea.vmem [#allocation2], %s1210_s0 }
  0x82   : > { %v424_v2 = vld [vmem:[#allocation6 + $0x78] sm:$0xff]  ;;  %1303 = vmatprep.subr.mxu1 %v472_v1  ;;  %v423_v6 = vld [vmem:[#allocation6 + $0x70] sm:$0xff]  ;;  %v422_v10 = vld [vmem:[#allocation6 + $0x68] sm:$0xff] }
  0x83   : > { %v456_v3 = vld [vmem:[#allocation6 + $0x178] sm:$0xff]  ;;  %1224 = vmatpush3.msra.mxu0 %v424_v2  ;;  %v455_v7 = vld [vmem:[#allocation6 + $0x170] sm:$0xff]  ;;  %v454_v11 = vld [vmem:[#allocation6 + $0x168] sm:$0xff] }
  0x84   : > { %1304 = vmatpush3.msra.mxu1 %v456_v3  ;;  %1225 = vmatprep.subr.mxu0 %v439_v4  ;;  %v437_v12 = vld [vmem:[#allocation6 + $0xe0] sm:$0xff]  ;;  %v436_v16 = vld [vmem:[#allocation6 + $0xd8] sm:$0xff]  ;;  %v435_v20 = vld [vmem:[#allocation6 + $0xd0] sm:$0xff] }
  0x85   : > { %1305 = vmatprep.subr.mxu1 %v471_v5  ;;  %1226 = vmatpush3.msra.mxu0 %v423_v6  ;;  %v469_v13 = vld [vmem:[#allocation6 + $0x1e0] sm:$0xff]  ;;  %v468_v17 = vld [vmem:[#allocation6 + $0x1d8] sm:$0xff]  ;;  %v467_v21 = vld [vmem:[#allocation6 + $0x1d0] sm:$0xff] }
  0x86   : > { %1306 = vmatpush3.msra.mxu1 %v455_v7  ;;  %1227 = vmatprep.subr.mxu0 %v438_v8  ;;  %v421_v14 = vld [vmem:[#allocation6 + $0x60] sm:$0xff]  ;;  %v420_v18 = vld [vmem:[#allocation6 + $0x58] sm:$0xff]  ;;  %v419_v22 = vld [vmem:[#allocation6 + $0x50] sm:$0xff] }
  0x87   : > { %1307 = vmatprep.subr.mxu1 %v470_v9  ;;  %v453_v15 = vld [vmem:[#allocation6 + $0x160] sm:$0xff]  ;;  %1228 = vmatpush3.msra.mxu0 %v422_v10  ;;  %v452_v19 = vld [vmem:[#allocation6 + $0x158] sm:$0xff]  ;;  %v451_v23 = vld [vmem:[#allocation6 + $0x150] sm:$0xff] }
  0x88   : > { %1308 = vmatpush3.msra.mxu1 %v454_v11  ;;  %1229 = vmatprep.subr.mxu0 %v437_v12  ;;  %v434_v24 = vld [vmem:[#allocation6 + $0xc8] sm:$0xff]  ;;  %v433_v28 = vld [vmem:[#allocation6 + $0xc0] sm:$0xff]  ;;  %v432_v32 = vld [vmem:[#allocation6 + $0xb8] sm:$0xff] }
  0x89   : > { %1309 = vmatprep.subr.mxu1 %v469_v13  ;;  %1230 = vmatpush3.msra.mxu0 %v421_v14  ;;  %v466_v25 = vld [vmem:[#allocation6 + $0x1c8] sm:$0xff]  ;;  %v465_v29 = vld [vmem:[#allocation6 + $0x1c0] sm:$0xff]  ;;  %v464_v33 = vld [vmem:[#allocation6 + $0x1b8] sm:$0xff] }
  0x8a   : > { %1310 = vmatpush3.msra.mxu1 %v453_v15  ;;  %1231 = vmatprep.subr.mxu0 %v436_v16  ;;  %v418_v26 = vld [vmem:[#allocation6 + $0x48] sm:$0xff]  ;;  %v417_v30 = vld [vmem:[#allocation6 + $0x40] sm:$0xff]  ;;  %v416_v34 = vld [vmem:[#allocation6 + $0x38] sm:$0xff] }
  0x8b   : > { %1311 = vmatprep.subr.mxu1 %v468_v17  ;;  %1232 = vmatpush3.msra.mxu0 %v420_v18  ;;  %v450_v27 = vld [vmem:[#allocation6 + $0x148] sm:$0xff]  ;;  %v449_v31 = vld [vmem:[#allocation6 + $0x140] sm:$0xff]  ;;  %v448_v35 = vld [vmem:[#allocation6 + $0x138] sm:$0xff] }
  0x8c   : > { %1312 = vmatpush3.msra.mxu1 %v452_v19  ;;  %1233 = vmatprep.subr.mxu0 %v435_v20  ;;  %v431_v36 = vld [vmem:[#allocation6 + $0xb0] sm:$0xff]  ;;  %v430_v40 = vld [vmem:[#allocation6 + $0xa8] sm:$0xff]  ;;  %v429_v44 = vld [vmem:[#allocation6 + $0xa0] sm:$0xff] }
  0x8d   : > { %1313 = vmatprep.subr.mxu1 %v467_v21  ;;  %1234 = vmatpush3.msra.mxu0 %v419_v22  ;;  %v463_v37 = vld [vmem:[#allocation6 + $0x1b0] sm:$0xff]  ;;  %v462_v41 = vld [vmem:[#allocation6 + $0x1a8] sm:$0xff]  ;;  %v461_v45 = vld [vmem:[#allocation6 + $0x1a0] sm:$0xff] }
  0x8e   : > { %1314 = vmatpush3.msra.mxu1 %v451_v23  ;;  %1235 = vmatprep.subr.mxu0 %v434_v24  ;;  %v415_v38 = vld [vmem:[#allocation6 + $0x30] sm:$0xff]  ;;  %v414_v42 = vld [vmem:[#allocation6 + $0x28] sm:$0xff]  ;;  %v413_v46 = vld [vmem:[#allocation6 + $0x20] sm:$0xff] }
  0x8f   : > { %1315 = vmatprep.subr.mxu1 %v466_v25  ;;  %1236 = vmatpush3.msra.mxu0 %v418_v26  ;;  %v447_v39 = vld [vmem:[#allocation6 + $0x130] sm:$0xff]  ;;  %v446_v43 = vld [vmem:[#allocation6 + $0x128] sm:$0xff]  ;;  %v445_v47 = vld [vmem:[#allocation6 + $0x120] sm:$0xff] }
  0x90   : > { %1316 = vmatpush3.msra.mxu1 %v450_v27  ;;  %1237 = vmatprep.subr.mxu0 %v433_v28  ;;  %v428_v48 = vld [vmem:[#allocation6 + $0x98] sm:$0xff]  ;;  %v427_v52 = vld [vmem:[#allocation6 + $0x90] sm:$0xff]  ;;  %v426_v56 = vld [vmem:[#allocation6 + $0x88] sm:$0xff] }
  0x91   : > { %1317 = vmatprep.subr.mxu1 %v465_v29  ;;  %1238 = vmatpush3.msra.mxu0 %v417_v30  ;;  %v460_v49 = vld [vmem:[#allocation6 + $0x198] sm:$0xff]  ;;  %v459_v53 = vld [vmem:[#allocation6 + $0x190] sm:$0xff]  ;;  %v458_v57 = vld [vmem:[#allocation6 + $0x188] sm:$0xff] }
  0x92   : > { %1318 = vmatpush3.msra.mxu1 %v449_v31  ;;  %1239 = vmatprep.subr.mxu0 %v432_v32  ;;  %v412_v50 = vld [vmem:[#allocation6 + $0x18] sm:$0xff]  ;;  %v411_v54 = vld [vmem:[#allocation6 + $0x10] sm:$0xff]  ;;  %v410_v58 = vld [vmem:[#allocation6 + $0x8] sm:$0xff] }
  0x93   : > { %1319 = vmatprep.subr.mxu1 %v464_v33  ;;  %1240 = vmatpush3.msra.mxu0 %v416_v34  ;;  %v444_v51 = vld [vmem:[#allocation6 + $0x118] sm:$0xff]  ;;  %v443_v55 = vld [vmem:[#allocation6 + $0x110] sm:$0xff]  ;;  %v442_v59 = vld [vmem:[#allocation6 + $0x108] sm:$0xff] }
  0x94   : > { %1320 = vmatpush3.msra.mxu1 %v448_v35  ;;  %1241 = vmatprep.subr.mxu0 %v431_v36  ;;  %v425_v60 = vld [vmem:[#allocation6 + $0x80] sm:$0xff]  ;;  %v346_v63 = vld [vmem:[%s2068_s17 + $0x8] sm:$0xff]  ;;  %v348_v1 = vld [vmem:[%s2068_s17 + $0x18] sm:$0xff] }
  0x95   : > { %1321 = vmatprep.subr.mxu1 %v463_v37  ;;  %1242 = vmatpush3.msra.mxu0 %v415_v38  ;;  %v457_v61 = vld [vmem:[#allocation6 + $0x180] sm:$0xff]  ;;  %v347_v3 = vld [vmem:[%s2068_s17 + $0x10] sm:$0xff]  ;;  %v350_v4 = vld [vmem:[%s2068_s17 + $0x28] sm:$0xff] }
  0x96   : > { %1322 = vmatpush3.msra.mxu1 %v447_v39  ;;  %1243 = vmatprep.subr.mxu0 %v430_v40  ;;  %v409_v62 = vld [vmem:[#allocation6] sm:$0xff]  ;;  %v352_v5 = vld [vmem:[%s2068_s17 + $0x38] sm:$0xff]  ;;  %v351_v7 = vld [vmem:[%s2068_s17 + $0x30] sm:$0xff] }
  0x97   : > { %1323 = vmatprep.subr.mxu1 %v462_v41  ;;  %1244 = vmatpush3.msra.mxu0 %v414_v42  ;;  %v441_v0 = vld [vmem:[#allocation6 + $0x100] sm:$0xff]  ;;  %v354_v8 = vld [vmem:[%s2068_s17 + $0x48] sm:$0xff]  ;;  %v356_v9 = vld [vmem:[%s2068_s17 + $0x58] sm:$0xff] }
  0x98   : > { %1324 = vmatpush3.msra.mxu1 %v446_v43  ;;  %1245 = vmatprep.subr.mxu0 %v429_v44  ;;  %v345_v2 = vld [vmem:[%s2068_s17] sm:$0xff]  ;;  %v355_v11 = vld [vmem:[%s2068_s17 + $0x50] sm:$0xff]  ;;  %v358_v12 = vld [vmem:[%s2068_s17 + $0x68] sm:$0xff] }
  0x99   : > { %1325 = vmatprep.subr.mxu1 %v461_v45  ;;  %1246 = vmatpush3.msra.mxu0 %v413_v46  ;;  %v349_v6 = vld [vmem:[%s2068_s17 + $0x20] sm:$0xff]  ;;  %v360_v13 = vld [vmem:[%s2068_s17 + $0x78] sm:$0xff]  ;;  %v359_v15 = vld [vmem:[%s2068_s17 + $0x70] sm:$0xff] }
  0x9a   : > { %1326 = vmatpush3.msra.mxu1 %v445_v47  ;;  %1247 = vmatprep.subr.mxu0 %v428_v48  ;;  %v353_v10 = vld [vmem:[%s2068_s17 + $0x40] sm:$0xff]  ;;  %v362_v16 = vld [vmem:[%s2068_s17 + $0x88] sm:$0xff]  ;;  %v364_v17 = vld [vmem:[%s2068_s17 + $0x98] sm:$0xff] }
  0x9b   : > { %1327 = vmatprep.subr.mxu1 %v460_v49  ;;  %1248 = vmatpush3.msra.mxu0 %v412_v50  ;;  %v357_v14 = vld [vmem:[%s2068_s17 + $0x60] sm:$0xff]  ;;  %v363_v19 = vld [vmem:[%s2068_s17 + $0x90] sm:$0xff]  ;;  %v366_v20 = vld [vmem:[%s2068_s17 + $0xa8] sm:$0xff] }
  0x9c   : > { %1328 = vmatpush3.msra.mxu1 %v444_v51  ;;  %1249 = vmatprep.subr.mxu0 %v427_v52  ;;  %v361_v18 = vld [vmem:[%s2068_s17 + $0x80] sm:$0xff]  ;;  %v368_v21 = vld [vmem:[%s2068_s17 + $0xb8] sm:$0xff]  ;;  %v367_v23 = vld [vmem:[%s2068_s17 + $0xb0] sm:$0xff] }
  0x9d   : > { %1329 = vmatprep.subr.mxu1 %v459_v53  ;;  %1250 = vmatpush3.msra.mxu0 %v411_v54  ;;  %v365_v22 = vld [vmem:[%s2068_s17 + $0xa0] sm:$0xff]  ;;  %v370_v24 = vld [vmem:[%s2068_s17 + $0xc8] sm:$0xff]  ;;  %v372_v25 = vld [vmem:[%s2068_s17 + $0xd8] sm:$0xff] }
  0x9e   : > { %1330 = vmatpush3.msra.mxu1 %v443_v55  ;;  %1251 = vmatprep.subr.mxu0 %v426_v56  ;;  %v369_v26 = vld [vmem:[%s2068_s17 + $0xc0] sm:$0xff]  ;;  %v371_v27 = vld [vmem:[%s2068_s17 + $0xd0] sm:$0xff]  ;;  %v374_v28 = vld [vmem:[%s2068_s17 + $0xe8] sm:$0xff] }
  0x9f   : > { %1331 = vmatprep.subr.mxu1 %v458_v57  ;;  %1252 = vmatpush3.msra.mxu0 %v410_v58  ;;  %v376_v29 = vld [vmem:[%s2068_s17 + $0xf8] sm:$0xff]  ;;  %v373_v30 = vld [vmem:[%s2068_s17 + $0xe0] sm:$0xff]  ;;  %v375_v31 = vld [vmem:[%s2068_s17 + $0xf0] sm:$0xff] }
  0xa0   : > { %1332 = vmatpush3.msra.mxu1 %v442_v59  ;;  %1253 = vmatprep.subr.mxu0 %v425_v60  ;;  %v378_v32 = vld [vmem:[%s2068_s17 + $0x108] sm:$0xff]  ;;  %v380_v33 = vld [vmem:[%s2068_s17 + $0x118] sm:$0xff]  ;;  %v377_v34 = vld [vmem:[%s2068_s17 + $0x100] sm:$0xff] }
  0xa1   : > { %1333 = vmatprep.subr.mxu1 %v457_v61  ;;  %1254 = vmatpush3.msra.mxu0 %v409_v62  ;;  %v379_v35 = vld [vmem:[%s2068_s17 + $0x110] sm:$0xff]  ;;  %v382_v36 = vld [vmem:[%s2068_s17 + $0x128] sm:$0xff]  ;;  %v384_v37 = vld [vmem:[%s2068_s17 + $0x138] sm:$0xff] }
  0xa2   : > { %544 = vmatprep.mubr.f32.mxu0 %v346_v63  ;;  %1334 = vmatpush3.msra.mxu1 %v441_v0  ;;  %v381_v38 = vld [vmem:[%s2068_s17 + $0x120] sm:$0xff]  ;;  %v383_v39 = vld [vmem:[%s2068_s17 + $0x130] sm:$0xff]  ;;  %v386_v40 = vld [vmem:[%s2068_s17 + $0x148] sm:$0xff] }
  0xa3   : > { %689 = vmatprep.mubr.f32.mxu1 %v348_v1  ;;  %545 = vmatmul.mubr.f32.vlgmr.msra.gmra.mxu0 %v345_v2  ;;  %v388_v41 = vld [vmem:[%s2068_s17 + $0x158] sm:$0xff]  ;;  %v385_v42 = vld [vmem:[%s2068_s17 + $0x140] sm:$0xff]  ;;  %v387_v43 = vld [vmem:[%s2068_s17 + $0x150] sm:$0xff] }
  0xa4   : > { %690 = vmatmul.mubr.f32.vlgmr.msra.gmra.mxu1 %v347_v3  ;;  %549 = vmatprep.mubr.f32.mxu0 %v350_v4  ;;  %v390_v44 = vld [vmem:[%s2068_s17 + $0x168] sm:$0xff]  ;;  %v392_v45 = vld [vmem:[%s2068_s17 + $0x178] sm:$0xff]  ;;  %v389_v46 = vld [vmem:[%s2068_s17 + $0x160] sm:$0xff] }
  0xa5   : > { %694 = vmatprep.mubr.f32.mxu1 %v352_v5  ;;  %v391_v47 = vld [vmem:[%s2068_s17 + $0x170] sm:$0xff]  ;;  %v394_v48 = vld [vmem:[%s2068_s17 + $0x188] sm:$0xff]  ;;  %v396_v49 = vld [vmem:[%s2068_s17 + $0x198] sm:$0xff] }
  0xa6   : > { %v393_v50 = vld [vmem:[%s2068_s17 + $0x180] sm:$0xff]  ;;  %v395_v51 = vld [vmem:[%s2068_s17 + $0x190] sm:$0xff]  ;;  %v398_v52 = vld [vmem:[%s2068_s17 + $0x1a8] sm:$0xff] }
  0xa7   : > { %550 = vmatmul.mubr.f32.gmra.mxu0 %v349_v6  ;;  %v400_v53 = vld [vmem:[%s2068_s17 + $0x1b8] sm:$0xff]  ;;  %v397_v54 = vld [vmem:[%s2068_s17 + $0x1a0] sm:$0xff]  ;;  %v399_v55 = vld [vmem:[%s2068_s17 + $0x1b0] sm:$0xff] }
  0xa8   : > { %695 = vmatmul.mubr.f32.gmra.mxu1 %v351_v7  ;;  %554 = vmatprep.mubr.f32.mxu0 %v354_v8  ;;  %v402_v56 = vld [vmem:[%s2068_s17 + $0x1c8] sm:$0xff]  ;;  %v404_v57 = vld [vmem:[%s2068_s17 + $0x1d8] sm:$0xff]  ;;  %v401_v58 = vld [vmem:[%s2068_s17 + $0x1c0] sm:$0xff] }
  0xa9   : > { %699 = vmatprep.mubr.f32.mxu1 %v356_v9  ;;  %v403_v59 = vld [vmem:[%s2068_s17 + $0x1d0] sm:$0xff]  ;;  %v406_v60 = vld [vmem:[%s2068_s17 + $0x1e8] sm:$0xff]  ;;  %v408_v61 = vld [vmem:[%s2068_s17 + $0x1f8] sm:$0xff] }
  0xaa   : > { %v405_v62 = vld [vmem:[%s2068_s17 + $0x1e0] sm:$0xff]  ;;  %v407_v63 = vld [vmem:[%s2068_s17 + $0x1f0] sm:$0xff] }
  0xab   : > { %555 = vmatmul.mubr.f32.gmra.mxu0 %v353_v10  ;;  %v2169_v2 = vld [vmem:[%s2474_s7] ss:$0 sm:$0xff] }
  0xac   : > { %700 = vmatmul.mubr.f32.gmra.mxu1 %v355_v11  ;;  %559 = vmatprep.mubr.f32.mxu0 %v358_v12 }
  0xad   : > { %704 = vmatprep.mubr.f32.mxu1 %v360_v13 }
  0xaf   : > { %560 = vmatmul.mubr.f32.gmra.mxu0 %v357_v14 }
  0xb0   : > { %705 = vmatmul.mubr.f32.gmra.mxu1 %v359_v15  ;;  %564 = vmatprep.mubr.f32.mxu0 %v362_v16 }
  0xb1   : > { %709 = vmatprep.mubr.f32.mxu1 %v364_v17 }
  0xb3   : > { %565 = vmatmul.mubr.f32.gmra.mxu0 %v361_v18 }
  0xb4   : > { %710 = vmatmul.mubr.f32.gmra.mxu1 %v363_v19  ;;  %569 = vmatprep.mubr.f32.mxu0 %v366_v20 }
  0xb5   : > { %714 = vmatprep.mubr.f32.mxu1 %v368_v21 }
  0xb7   : > { %570 = vmatmul.mubr.f32.gmra.mxu0 %v365_v22 }
  0xb8   : > { %715 = vmatmul.mubr.f32.gmra.mxu1 %v367_v23  ;;  %574 = vmatprep.mubr.f32.mxu0 %v370_v24 }
  0xb9   : > { %719 = vmatprep.mubr.f32.mxu1 %v372_v25 }
  0xbb   : > { %575 = vmatmul.mubr.f32.gmra.mxu0 %v369_v26 }
  0xbc   : > { %720 = vmatmul.mubr.f32.gmra.mxu1 %v371_v27  ;;  %579 = vmatprep.mubr.f32.mxu0 %v374_v28 }
  0xbd   : > { %724 = vmatprep.mubr.f32.mxu1 %v376_v29 }
  0xbf   : > { %580 = vmatmul.mubr.f32.gmra.mxu0 %v373_v30 }
  0xc0   : > { %725 = vmatmul.mubr.f32.gmra.mxu1 %v375_v31  ;;  %584 = vmatprep.mubr.f32.mxu0 %v378_v32 }
  0xc1   : > { %729 = vmatprep.mubr.f32.mxu1 %v380_v33 }
  0xc3   : > { %585 = vmatmul.mubr.f32.gmra.mxu0 %v377_v34 }
  0xc4   : > { %730 = vmatmul.mubr.f32.gmra.mxu1 %v379_v35  ;;  %589 = vmatprep.mubr.f32.mxu0 %v382_v36 }
  0xc5   : > { %734 = vmatprep.mubr.f32.mxu1 %v384_v37 }
  0xc7   : > { %590 = vmatmul.mubr.f32.gmra.mxu0 %v381_v38 }
  0xc8   : > { %735 = vmatmul.mubr.f32.gmra.mxu1 %v383_v39  ;;  %594 = vmatprep.mubr.f32.mxu0 %v386_v40 }
  0xc9   : > { %739 = vmatprep.mubr.f32.mxu1 %v388_v41 }
  0xcb   : > { %595 = vmatmul.mubr.f32.gmra.mxu0 %v385_v42 }
  0xcc   : > { %740 = vmatmul.mubr.f32.gmra.mxu1 %v387_v43  ;;  %599 = vmatprep.mubr.f32.mxu0 %v390_v44 }
  0xcd   : > { %744 = vmatprep.mubr.f32.mxu1 %v392_v45 }
  0xcf   : > { %600 = vmatmul.mubr.f32.gmra.mxu0 %v389_v46 }
  0xd0   : > { %745 = vmatmul.mubr.f32.gmra.mxu1 %v391_v47  ;;  %604 = vmatprep.mubr.f32.mxu0 %v394_v48 }
  0xd1   : > { %749 = vmatprep.mubr.f32.mxu1 %v396_v49 }
  0xd3   : > { %605 = vmatmul.mubr.f32.gmra.mxu0 %v393_v50 }
  0xd4   : > { %750 = vmatmul.mubr.f32.gmra.mxu1 %v395_v51  ;;  %609 = vmatprep.mubr.f32.mxu0 %v398_v52 }
  0xd5   : > { %754 = vmatprep.mubr.f32.mxu1 %v400_v53 }
  0xd7   : > { %610 = vmatmul.mubr.f32.gmra.mxu0 %v397_v54 }
  0xd8   : > { %755 = vmatmul.mubr.f32.gmra.mxu1 %v399_v55  ;;  %614 = vmatprep.mubr.f32.mxu0 %v402_v56 }
  0xd9   : > { %759 = vmatprep.mubr.f32.mxu1 %v404_v57 }
  0xdb   : > { %615 = vmatmul.mubr.f32.gmra.mxu0 %v401_v58 }
  0xdc   : > { %760 = vmatmul.mubr.f32.gmra.mxu1 %v403_v59  ;;  %619 = vmatprep.mubr.f32.mxu0 %v406_v60 }
  0xdd   : > { %764 = vmatprep.mubr.f32.mxu1 %v408_v61 }
  0xdf   : > { %620 = vmatmul.mubr.f32.gmra.mxu0 %v405_v62 }
  0xe0   : > { %765 = vmatmul.mubr.f32.gmra.mxu1 %v407_v63 }
 0x163   : > { %v1255_v0 = vpop.f32.mrf.mxu0 }
 0x164   : > { %v1335_v1 = vpop.f32.mrf.mxu1 }
 0x165   : > { %v1256_v3 = vpop.f32.mrf.mxu0 }
 0x166   : > { %v1336_v4 = vpop.f32.mrf.mxu1  ;;  %v1257_v5 = vadd.f32 %v1256_v3, %v1255_v0 }
 0x167   : > { %v1258_v6 = vpop.f32.mrf.mxu0  ;;  %v1337_v9 = vadd.f32 %v1336_v4, %v1335_v1 }
 0x168   : > { %v1338_v7 = vpop.f32.mrf.mxu1  ;;  %v547_v8 = vadd.f32 %v1257_v5, %v2169_v2 }
 0x169   : > { %v1259_v10 = vpop.f32.mrf.mxu0 }
 0x16a   : > { %v1339_v11 = vpop.f32.mrf.mxu1  ;;  %v692_v12 = vadd.f32 %v1337_v9, %v547_v8  ;;  %v1260_v13 = vadd.f32 %v1259_v10, %v1258_v6 }
 0x16b   : > { %v1261_v14 = vpop.f32.mrf.mxu0  ;;  %v1340_v17 = vadd.f32 %v1339_v11, %v1338_v7 }
 0x16c   : > { %v1341_v15 = vpop.f32.mrf.mxu1  ;;  %772 = vst [vmem:[%s2173_s23] sm:$0xff] %v692_v12  ;;  %v552_v16 = vadd.f32 %v1260_v13, %v2169_v2 }
 0x16d   : > { %v1262_v18 = vpop.f32.mrf.mxu0 }
 0x16e   : > { %v1342_v19 = vpop.f32.mrf.mxu1  ;;  %v697_v20 = vadd.f32 %v1340_v17, %v552_v16  ;;  %v1263_v21 = vadd.f32 %v1262_v18, %v1261_v14 }
 0x16f   : > { %v1264_v22 = vpop.f32.mrf.mxu0  ;;  %v1343_v25 = vadd.f32 %v1342_v19, %v1341_v15 }
 0x170   : > { %v1344_v23 = vpop.f32.mrf.mxu1  ;;  %773 = vst [vmem:[%s2173_s23 + $0x8] sm:$0xff] %v697_v20  ;;  %v557_v24 = vadd.f32 %v1263_v21, %v2169_v2 }
 0x171   : > { %v1265_v26 = vpop.f32.mrf.mxu0 }
 0x172   : > { %v1345_v27 = vpop.f32.mrf.mxu1  ;;  %v702_v28 = vadd.f32 %v1343_v25, %v557_v24  ;;  %v1266_v29 = vadd.f32 %v1265_v26, %v1264_v22 }
 0x173   : > { %v1267_v30 = vpop.f32.mrf.mxu0  ;;  %v1346_v33 = vadd.f32 %v1345_v27, %v1344_v23 }
 0x174   : > { %v1347_v31 = vpop.f32.mrf.mxu1  ;;  %774 = vst [vmem:[%s2173_s23 + $0x10] sm:$0xff] %v702_v28  ;;  %v562_v32 = vadd.f32 %v1266_v29, %v2169_v2 }
 0x175   : > { %v1268_v34 = vpop.f32.mrf.mxu0 }
 0x176   : > { %v1348_v35 = vpop.f32.mrf.mxu1  ;;  %v707_v36 = vadd.f32 %v1346_v33, %v562_v32  ;;  %v1269_v37 = vadd.f32 %v1268_v34, %v1267_v30 }
 0x177   : > { %v1270_v38 = vpop.f32.mrf.mxu0  ;;  %v1349_v41 = vadd.f32 %v1348_v35, %v1347_v31 }
 0x178   : > { %v1350_v39 = vpop.f32.mrf.mxu1  ;;  %775 = vst [vmem:[%s2173_s23 + $0x18] sm:$0xff] %v707_v36  ;;  %v567_v40 = vadd.f32 %v1269_v37, %v2169_v2 }
 0x179   : > { %v1271_v42 = vpop.f32.mrf.mxu0 }
 0x17a   : > { %v1351_v43 = vpop.f32.mrf.mxu1  ;;  %v712_v44 = vadd.f32 %v1349_v41, %v567_v40  ;;  %v1272_v45 = vadd.f32 %v1271_v42, %v1270_v38 }
 0x17b   : > { %v1273_v46 = vpop.f32.mrf.mxu0  ;;  %v1352_v49 = vadd.f32 %v1351_v43, %v1350_v39 }
 0x17c   : > { %v1353_v47 = vpop.f32.mrf.mxu1  ;;  %776 = vst [vmem:[%s2173_s23 + $0x20] sm:$0xff] %v712_v44  ;;  %v572_v48 = vadd.f32 %v1272_v45, %v2169_v2 }
 0x17d   : > { %v1274_v50 = vpop.f32.mrf.mxu0 }
 0x17e   : > { %v1354_v51 = vpop.f32.mrf.mxu1  ;;  %v717_v52 = vadd.f32 %v1352_v49, %v572_v48  ;;  %v1275_v53 = vadd.f32 %v1274_v50, %v1273_v46 }
 0x17f   : > { %v1276_v54 = vpop.f32.mrf.mxu0  ;;  %v1355_v57 = vadd.f32 %v1354_v51, %v1353_v47 }
 0x180   : > { %v1356_v55 = vpop.f32.mrf.mxu1  ;;  %777 = vst [vmem:[%s2173_s23 + $0x28] sm:$0xff] %v717_v52  ;;  %v577_v56 = vadd.f32 %v1275_v53, %v2169_v2 }
 0x181   : > { %v1277_v58 = vpop.f32.mrf.mxu0 }
 0x182   : > { %v1357_v59 = vpop.f32.mrf.mxu1  ;;  %v722_v60 = vadd.f32 %v1355_v57, %v577_v56  ;;  %v1278_v61 = vadd.f32 %v1277_v58, %v1276_v54 }
 0x183   : > { %v1279_v62 = vpop.f32.mrf.mxu0  ;;  %v1358_v1 = vadd.f32 %v1357_v59, %v1356_v55 }
 0x184   : > { %v1359_v63 = vpop.f32.mrf.mxu1  ;;  %778 = vst [vmem:[%s2173_s23 + $0x30] sm:$0xff] %v722_v60  ;;  %v582_v0 = vadd.f32 %v1278_v61, %v2169_v2 }
 0x185   : > { %v1280_v3 = vpop.f32.mrf.mxu0 }
 0x186   : > { %v1360_v4 = vpop.f32.mrf.mxu1  ;;  %v727_v5 = vadd.f32 %v1358_v1, %v582_v0  ;;  %v1281_v6 = vadd.f32 %v1280_v3, %v1279_v62 }
 0x187   : > { %v1282_v7 = vpop.f32.mrf.mxu0  ;;  %v1361_v10 = vadd.f32 %v1360_v4, %v1359_v63 }
 0x188   : > { %v1362_v8 = vpop.f32.mrf.mxu1  ;;  %779 = vst [vmem:[%s2173_s23 + $0x38] sm:$0xff] %v727_v5  ;;  %v587_v9 = vadd.f32 %v1281_v6, %v2169_v2 }
 0x189   : > { %v1283_v11 = vpop.f32.mrf.mxu0 }
 0x18a   : > { %v1363_v12 = vpop.f32.mrf.mxu1  ;;  %v732_v13 = vadd.f32 %v1361_v10, %v587_v9  ;;  %v1284_v14 = vadd.f32 %v1283_v11, %v1282_v7 }
 0x18b   : > { %v1285_v15 = vpop.f32.mrf.mxu0  ;;  %v1364_v18 = vadd.f32 %v1363_v12, %v1362_v8 }
 0x18c   : > { %v1365_v16 = vpop.f32.mrf.mxu1  ;;  %780 = vst [vmem:[%s2173_s23 + $0x40] sm:$0xff] %v732_v13  ;;  %v592_v17 = vadd.f32 %v1284_v14, %v2169_v2 }
 0x18d   : > { %v1286_v19 = vpop.f32.mrf.mxu0 }
 0x18e   : > { %v1366_v20 = vpop.f32.mrf.mxu1  ;;  %v737_v21 = vadd.f32 %v1364_v18, %v592_v17  ;;  %v1287_v22 = vadd.f32 %v1286_v19, %v1285_v15 }
 0x18f   : > { %v1288_v23 = vpop.f32.mrf.mxu0  ;;  %v1367_v26 = vadd.f32 %v1366_v20, %v1365_v16 }
 0x190   : > { %v1368_v24 = vpop.f32.mrf.mxu1  ;;  %781 = vst [vmem:[%s2173_s23 + $0x48] sm:$0xff] %v737_v21  ;;  %v597_v25 = vadd.f32 %v1287_v22, %v2169_v2 }
 0x191   : > { %v1289_v27 = vpop.f32.mrf.mxu0 }
 0x192   : > { %v1369_v28 = vpop.f32.mrf.mxu1  ;;  %v742_v29 = vadd.f32 %v1367_v26, %v597_v25  ;;  %v1290_v30 = vadd.f32 %v1289_v27, %v1288_v23 }
 0x193   : > { %v1291_v31 = vpop.f32.mrf.mxu0  ;;  %v1370_v34 = vadd.f32 %v1369_v28, %v1368_v24 }
 0x194   : > { %v1371_v32 = vpop.f32.mrf.mxu1  ;;  %782 = vst [vmem:[%s2173_s23 + $0x50] sm:$0xff] %v742_v29  ;;  %v602_v33 = vadd.f32 %v1290_v30, %v2169_v2 }
 0x195   : > { %v1292_v35 = vpop.f32.mrf.mxu0 }
 0x196   : > { %v1372_v36 = vpop.f32.mrf.mxu1  ;;  %v747_v37 = vadd.f32 %v1370_v34, %v602_v33  ;;  %v1293_v38 = vadd.f32 %v1292_v35, %v1291_v31 }
 0x197   : > { %v1294_v39 = vpop.f32.mrf.mxu0  ;;  %v1373_v42 = vadd.f32 %v1372_v36, %v1371_v32 }
 0x198   : > { %v1374_v40 = vpop.f32.mrf.mxu1  ;;  %783 = vst [vmem:[%s2173_s23 + $0x58] sm:$0xff] %v747_v37  ;;  %v607_v41 = vadd.f32 %v1293_v38, %v2169_v2 }
 0x199   : > { %v1295_v43 = vpop.f32.mrf.mxu0 }
 0x19a   : > { %v1375_v44 = vpop.f32.mrf.mxu1  ;;  %v752_v45 = vadd.f32 %v1373_v42, %v607_v41  ;;  %v1296_v46 = vadd.f32 %v1295_v43, %v1294_v39 }
 0x19b   : > { %v1297_v47 = vpop.f32.mrf.mxu0  ;;  %v1376_v50 = vadd.f32 %v1375_v44, %v1374_v40 }
 0x19c   : > { %v1377_v48 = vpop.f32.mrf.mxu1  ;;  %784 = vst [vmem:[%s2173_s23 + $0x60] sm:$0xff] %v752_v45  ;;  %v612_v49 = vadd.f32 %v1296_v46, %v2169_v2 }
 0x19d   : > { %v1298_v51 = vpop.f32.mrf.mxu0 }
 0x19e   : > { %v1378_v52 = vpop.f32.mrf.mxu1  ;;  %v757_v53 = vadd.f32 %v1376_v50, %v612_v49  ;;  %v1299_v54 = vadd.f32 %v1298_v51, %v1297_v47 }
 0x19f   : > { %v1300_v55 = vpop.f32.mrf.mxu0  ;;  %v1379_v58 = vadd.f32 %v1378_v52, %v1377_v48 }
 0x1a0   : > { %v1380_v56 = vpop.f32.mrf.mxu1  ;;  %785 = vst [vmem:[%s2173_s23 + $0x68] sm:$0xff] %v757_v53  ;;  %v617_v57 = vadd.f32 %v1299_v54, %v2169_v2 }
 0x1a1   : > { %v1301_v59 = vpop.f32.mrf.mxu0 }
 0x1a2   : > { %v1381_v60 = vpop.f32.mrf.mxu1  ;;  %v762_v61 = vadd.f32 %v1379_v58, %v617_v57  ;;  %v1302_v62 = vadd.f32 %v1301_v59, %v1300_v55 }
 0x1a3   : > { %v1382_v0 = vadd.f32 %v1381_v60, %v1380_v56 }
 0x1a4   : > { %786 = vst [vmem:[%s2173_s23 + $0x70] sm:$0xff] %v762_v61  ;;  %v622_v63 = vadd.f32 %v1302_v62, %v2169_v2 }
 0x1a6   : > { %v767_v1 = vadd.f32 %v1382_v0, %v622_v63 }
 0x1a8   : > { %787 = vst [vmem:[%s2173_s23 + $0x78] sm:$0xff] %v767_v1 }
 0x1a9 PF: > { %v837_v3 = vld [vmem:[%s2079_s21 + $0xf8] sm:$0xff]  ;;  %v836_v4 = vld [vmem:[%s2079_s21 + $0xf0] sm:$0xff]  ;;  %v835_v5 = vld [vmem:[%s2079_s21 + $0xe8] sm:$0xff]  ;;  %s2475_s20 = sld [smem:[#allocation17_spill]]  ;;  %v1812_v36 = vmov 0.0   ;;  %v840_v51 = vlaneseq  ;;  %p2479_p1 = scmp.ne.s32.totalorder %s2460_s14, 0 }
 0x1aa   : > { %850 = vmatprep.subr.mxu0 %v837_v3  ;;  %1383 = vmatprep.subr.mxu1 %v837_v3  ;;  %v834_v6 = vld [vmem:[%s2079_s21 + $0xe0] sm:$0xff]  ;;  %v833_v2 = vld [vmem:[%s2079_s21 + $0xd8] sm:$0xff]  ;;  %v832_v7 = vld [vmem:[%s2079_s21 + $0xd0] sm:$0xff]  ;;  %s2477_s29 = sld [smem:[#allocation31_spill]]  ;;  %s1813_s10 = smov [#allocation9]  }
 0x1ab   : > { %851 = vmatpush1.msra.mxu0 %v836_v4  ;;  %1399 = vmatpush1.msra.mxu1 %v836_v4  ;;  %v831_v8 = vld [vmem:[%s2079_s21 + $0xc8] sm:$0xff]  ;;  %v830_v9 = vld [vmem:[%s2079_s21 + $0xc0] sm:$0xff]  ;;  %v829_v10 = vld [vmem:[%s2079_s21 + $0xb8] sm:$0xff]  ;;  %v841_v52 = vshrl.u32 %v840_v51, 7  ;;  %s1653_s4 = sshll.u32 %s1813_s10, 4  ;;  %s1654_s4 = int_to_ptr.vmem [resolvable:$false] %s1653_s4 }
 0x1ac   : > { %852 = vmatprep.subr.mxu0 %v835_v5  ;;  %1384 = vmatprep.subr.mxu1 %v835_v5  ;;  %v828_v11 = vld [vmem:[%s2079_s21 + $0xb0] sm:$0xff]  ;;  %v827_v12 = vld [vmem:[%s2079_s21 + $0xa8] sm:$0xff]  ;;  %v826_v13 = vld [vmem:[%s2079_s21 + $0xa0] sm:$0xff]  ;;  %s1655_s7 = scalar_lea.vmem %s1654_s4, 8192 }
 0x1ad   : > { %853 = vmatpush1.msra.mxu0 %v834_v6  ;;  %1400 = vmatpush1.msra.mxu1 %v834_v6  ;;  %v825_v14 = vld [vmem:[%s2079_s21 + $0x98] sm:$0xff]  ;;  %v824_v15 = vld [vmem:[%s2079_s21 + $0x90] sm:$0xff]  ;;  %v823_v16 = vld [vmem:[%s2079_s21 + $0x88] sm:$0xff]  ;;  %v842_v53 = vsub.s32 0, %v841_v52  ;;  %v846_v55 = vsub.s32 1, %v841_v52 }
 0x1ae   : > { %854 = vmatprep.subr.mxu0 %v833_v2  ;;  %1385 = vmatprep.subr.mxu1 %v833_v2  ;;  %v822_v17 = vld [vmem:[%s2079_s21 + $0x80] sm:$0xff]  ;;  %v821_v18 = vld [vmem:[%s2079_s21 + $0x78] sm:$0xff]  ;;  %v820_v19 = vld [vmem:[%s2079_s21 + $0x70] sm:$0xff] }
 0x1af   : > { %855 = vmatpush1.msra.mxu0 %v832_v7  ;;  %1401 = vmatpush1.msra.mxu1 %v832_v7  ;;  %v819_v20 = vld [vmem:[%s2079_s21 + $0x68] sm:$0xff]  ;;  %v818_v21 = vld [vmem:[%s2079_s21 + $0x60] sm:$0xff]  ;;  %v817_v22 = vld [vmem:[%s2079_s21 + $0x58] sm:$0xff]  ;;  %s1211_s26 = sshll.u32 %s2475_s20, 7  ;;  %s1222_s12 = sshll.u32 %s2475_s20, 6 }
 0x1b0   : > { %856 = vmatprep.subr.mxu0 %v831_v8  ;;  %1386 = vmatprep.subr.mxu1 %v831_v8  ;;  %v816_v23 = vld [vmem:[%s2079_s21 + $0x50] sm:$0xff]  ;;  %v815_v24 = vld [vmem:[%s2079_s21 + $0x48] sm:$0xff]  ;;  %v814_v25 = vld [vmem:[%s2079_s21 + $0x40] sm:$0xff]  ;;  %s2239_s28 = scalar_lea.vmem [#allocation2], %s1211_s26  ;;  %s2478_s13 = smov %s2477_s29 }
 0x1b1   : > { %857 = vmatpush1.msra.mxu0 %v830_v9  ;;  %1402 = vmatpush1.msra.mxu1 %v830_v9  ;;  %v813_v26 = vld [vmem:[%s2079_s21 + $0x38] sm:$0xff]  ;;  %v812_v27 = vld [vmem:[%s2079_s21 + $0x30] sm:$0xff]  ;;  %v811_v28 = vld [vmem:[%s2079_s21 + $0x28] sm:$0xff] }
 0x1b2   : > { %858 = vmatprep.subr.mxu0 %v829_v10  ;;  %1387 = vmatprep.subr.mxu1 %v829_v10  ;;  %v810_v29 = vld [vmem:[%s2079_s21 + $0x20] sm:$0xff]  ;;  %v809_v30 = vld [vmem:[%s2079_s21 + $0x18] sm:$0xff]  ;;  %v808_v31 = vld [vmem:[%s2079_s21 + $0x10] sm:$0xff] }
 0x1b3   : > { %859 = vmatpush1.msra.mxu0 %v828_v11  ;;  %1403 = vmatpush1.msra.mxu1 %v828_v11  ;;  %v807_v32 = vld [vmem:[%s2079_s21 + $0x8] sm:$0xff]  ;;  %v806_v33 = vld [vmem:[%s2079_s21] sm:$0xff]  ;;  %v792_v39 = vld [vmem:[%s2239_s28 + $0x10] sm:$0xff]  ;;  %s1057_s21 = sadd.s32 %s1222_s12, %s2087_s9  ;;  %s1060_s9 = sshll.u32 %s2099_s24, 4  ;;  %s2332_s9 = int_to_ptr.vmem [resolvable:$true] %s1060_s9 }
 0x1b4   : > { %860 = vmatprep.subr.mxu0 %v827_v12  ;;  %1388 = vmatprep.subr.mxu1 %v827_v12  ;;  %v790_v34 = vld [vmem:[%s2239_s28] sm:$0xff]  ;;  %v791_v37 = vld [vmem:[%s2239_s28 + $0x8] sm:$0xff]  ;;  %v800_v40 = vld [vmem:[%s2239_s28 + $0x50] sm:$0xff]  ;;  %s1216_s11 = sshll.u32 %s1057_s21, 7  ;;  %s1649_s27 = scalar_lea.vmem %s2332_s9, 4096 }
 0x1b5   : > { %861 = vmatpush1.msra.mxu0 %v826_v13  ;;  %1404 = vmatpush1.msra.mxu1 %v826_v13  ;;  %v798_v35 = vld [vmem:[%s2239_s28 + $0x40] sm:$0xff]  ;;  %v799_v38 = vld [vmem:[%s2239_s28 + $0x48] sm:$0xff]  ;;  %v793_v41 = vld [vmem:[%s2239_s28 + $0x18] sm:$0xff]  ;;  %s2330_s1 = scalar_lea.hbm %s2477_s29, %s1216_s11  ;;  %p1650_p2 = scmp.ne.s32.totalorder %s2332_s9, %s1649_s27 }
 0x1b6   : > { %862 = vmatprep.subr.mxu0 %v825_v14  ;;  %1389 = vmatprep.subr.mxu1 %v825_v14  ;;  %v801_v42 = vld [vmem:[%s2239_s28 + $0x58] sm:$0xff]  ;;  %v794_v43 = vld [vmem:[%s2239_s28 + $0x20] sm:$0xff]  ;;  %v795_v45 = vld [vmem:[%s2239_s28 + $0x28] sm:$0xff]  ;;  %p1656_p5 = scmp.lt.s32.totalorder %s2332_s9, %s1654_s4  ;;  %p1657_p4 = scmp.lt.s32.totalorder %s1655_s7, %s1649_s27 }
 0x1b7   : > { %863 = vmatpush1.msra.mxu0 %v824_v15  ;;  %1405 = vmatpush1.msra.mxu1 %v824_v15  ;;  %v802_v44 = vld [vmem:[%s2239_s28 + $0x60] sm:$0xff]  ;;  %v803_v46 = vld [vmem:[%s2239_s28 + $0x68] sm:$0xff]  ;;  %v796_v47 = vld [vmem:[%s2239_s28 + $0x30] sm:$0xff]  ;;  %p1651_p0 = pnand %p1650_p2, %p2479_p1 }
 0x1b8   : > { %864 = vmatprep.subr.mxu0 %v823_v16  ;;  %1390 = vmatprep.subr.mxu1 %v823_v16  ;;  %v804_v48 = vld [vmem:[%s2239_s28 + $0x70] sm:$0xff]  ;;  %v797_v49 = vld [vmem:[%s2239_s28 + $0x38] sm:$0xff]  ;;  %v838_v54 = vld [vmem:[%s337_s16] sm:$0x3]  ;;  %s2342_s16 = scalar_lea.sflag [#allocation5], %s327_s15  ;;  %p1658_p13 = por %p1657_p4, %p1656_p5 }
 0x1b9   : > { %865 = vmatpush1.msra.mxu0 %v822_v17  ;;  %1406 = vmatpush1.msra.mxu1 %v822_v17  ;;  %v805_v50 = vld [vmem:[%s2239_s28 + $0x78] sm:$0xff]  ;;  %v2262_v56 = vrot.slane %v838_v54, %v842_v53  ;;  %v2264_v57 = vrot.slane %v838_v54, %v846_v55  ;;  %p1652_p7 = pneg %p1651_p0 }
 0x1ba   : > { %866 = vmatprep.subr.mxu0 %v821_v18  ;;  %1391 = vmatprep.subr.mxu1 %v821_v18 }
 0x1bb   : > { %867 = vmatpush1.msra.mxu0 %v820_v19  ;;  %1407 = vmatpush1.msra.mxu1 %v820_v19  ;;  %p1659_p9 = pnand %p1658_p13, %p1652_p7 }
 0x1bc   : > { %868 = vmatprep.subr.mxu0 %v819_v20  ;;  %1392 = vmatprep.subr.mxu1 %v819_v20 }
 0x1bd   : > { %869 = vmatpush1.msra.mxu0 %v818_v21  ;;  %1408 = vmatpush1.msra.mxu1 %v818_v21 }
 0x1be   : > { %870 = vmatprep.subr.mxu0 %v817_v22  ;;  %1393 = vmatprep.subr.mxu1 %v817_v22 }
 0x1bf   : > { %871 = vmatpush1.msra.mxu0 %v816_v23  ;;  %1409 = vmatpush1.msra.mxu1 %v816_v23 }
 0x1c0   : > { %872 = vmatprep.subr.mxu0 %v815_v24  ;;  %1394 = vmatprep.subr.mxu1 %v815_v24 }
 0x1c1   : > { %873 = vmatpush1.msra.mxu0 %v814_v25  ;;  %1410 = vmatpush1.msra.mxu1 %v814_v25 }
 0x1c2   : > { %874 = vmatprep.subr.mxu0 %v813_v26  ;;  %1395 = vmatprep.subr.mxu1 %v813_v26 }
 0x1c3   : > { %875 = vmatpush1.msra.mxu0 %v812_v27  ;;  %1411 = vmatpush1.msra.mxu1 %v812_v27 }
 0x1c4   : > { %876 = vmatprep.subr.mxu0 %v811_v28  ;;  %1396 = vmatprep.subr.mxu1 %v811_v28 }
 0x1c5   : > { %877 = vmatpush1.msra.mxu0 %v810_v29  ;;  %1412 = vmatpush1.msra.mxu1 %v810_v29 }
 0x1c6   : > { %878 = vmatprep.subr.mxu0 %v809_v30  ;;  %1397 = vmatprep.subr.mxu1 %v809_v30 }
 0x1c7   : > { %879 = vmatpush1.msra.mxu0 %v808_v31  ;;  %1413 = vmatpush1.msra.mxu1 %v808_v31 }
 0x1c8   : > { %880 = vmatprep.subr.mxu0 %v807_v32  ;;  %1398 = vmatprep.subr.mxu1 %v807_v32 }
 0x1c9   : > { %881 = vmatpush1.msra.mxu0 %v806_v33  ;;  %1414 = vmatpush1.msra.mxu1 %v806_v33 }
 0x1ca   : > { %914 = vmatprep.mubr.f32.mxu0 %v1812_v36  ;;  %962 = vmatprep.mubr.f32.mxu1 %v1812_v36 }
 0x1cb   : > { %915 = vmatmul.mubr.f32.vlgmr.msra.gmra.mxu0 %v790_v34  ;;  %963 = vmatmul.mubr.f32.vlgmr.msra.gmra.mxu1 %v798_v35 }
 0x1cc   : > { %920 = vmatprep.mubr.f32.mxu0 %v1812_v36  ;;  %968 = vmatprep.mubr.f32.mxu1 %v1812_v36 }
 0x1cf   : > { %921 = vmatmul.mubr.f32.gmra.mxu0 %v791_v37  ;;  %969 = vmatmul.mubr.f32.gmra.mxu1 %v799_v38 }
 0x1d0   : > { %926 = vmatprep.mubr.f32.mxu0 %v1812_v36  ;;  %974 = vmatprep.mubr.f32.mxu1 %v1812_v36 }
 0x1d3   : > { %927 = vmatmul.mubr.f32.gmra.mxu0 %v792_v39  ;;  %975 = vmatmul.mubr.f32.gmra.mxu1 %v800_v40 }
 0x1d4   : > { %932 = vmatprep.mubr.f32.mxu0 %v1812_v36  ;;  %980 = vmatprep.mubr.f32.mxu1 %v1812_v36 }
 0x1d7   : > { %933 = vmatmul.mubr.f32.gmra.mxu0 %v793_v41  ;;  %981 = vmatmul.mubr.f32.gmra.mxu1 %v801_v42 }
 0x1d8   : > { %938 = vmatprep.mubr.f32.mxu0 %v1812_v36  ;;  %986 = vmatprep.mubr.f32.mxu1 %v1812_v36 }
 0x1db   : > { %939 = vmatmul.mubr.f32.gmra.mxu0 %v794_v43  ;;  %987 = vmatmul.mubr.f32.gmra.mxu1 %v802_v44 }
 0x1dc   : > { %944 = vmatprep.mubr.f32.mxu0 %v1812_v36  ;;  %992 = vmatprep.mubr.f32.mxu1 %v1812_v36 }
 0x1df   : > { %945 = vmatmul.mubr.f32.gmra.mxu0 %v795_v45  ;;  %993 = vmatmul.mubr.f32.gmra.mxu1 %v803_v46 }
 0x1e0   : > { %950 = vmatprep.mubr.f32.mxu0 %v1812_v36  ;;  %998 = vmatprep.mubr.f32.mxu1 %v1812_v36 }
 0x1e3   : > { %951 = vmatmul.mubr.f32.gmra.mxu0 %v796_v47  ;;  %999 = vmatmul.mubr.f32.gmra.mxu1 %v804_v48 }
 0x1e4   : > { %956 = vmatprep.mubr.f32.mxu0 %v1812_v36  ;;  %1004 = vmatprep.mubr.f32.mxu1 %v1812_v36 }
 0x1e7   : > { %957 = vmatmul.mubr.f32.gmra.mxu0 %v797_v49  ;;  %1005 = vmatmul.mubr.f32.gmra.mxu1 %v805_v50 }
 0x28b   : > { %v916_v58 = vpop.f32.mrf.mxu0  ;;  %v964_v59 = vpop.f32.mrf.mxu1 }
 0x28c   : > { %v917_v60 = vadd.f32 %v916_v58, %v2262_v56  ;;  %v965_v61 = vadd.f32 %v964_v59, %v2262_v56 }
 0x28d   : > { %v918_v62 = vpop.f32.mrf.mxu0  ;;  %v966_v63 = vpop.f32.mrf.mxu1 }
 0x28e   : > { %1011 = vst [vmem:[%s2099_s24] sm:$0xff] %v917_v60  ;;  %1027 = vst [vmem:[%s2099_s24 + $0x80] sm:$0xff] %v965_v61  ;;  %v919_v0 = vadd.f32 %v918_v62, %v2264_v57  ;;  %v967_v1 = vadd.f32 %v966_v63, %v2264_v57 }
 0x28f   : > { %v922_v3 = vpop.f32.mrf.mxu0  ;;  %v970_v4 = vpop.f32.mrf.mxu1 }
 0x290   : > { %1012 = vst [vmem:[%s2099_s24 + $0x8] sm:$0xff] %v919_v0  ;;  %1028 = vst [vmem:[%s2099_s24 + $0x88] sm:$0xff] %v967_v1  ;;  %v923_v5 = vadd.f32 %v922_v3, %v2262_v56  ;;  %v971_v6 = vadd.f32 %v970_v4, %v2262_v56 }
 0x291   : > { %v924_v2 = vpop.f32.mrf.mxu0  ;;  %v972_v7 = vpop.f32.mrf.mxu1 }
 0x292   : > { %1013 = vst [vmem:[%s2099_s24 + $0x10] sm:$0xff] %v923_v5  ;;  %1029 = vst [vmem:[%s2099_s24 + $0x90] sm:$0xff] %v971_v6  ;;  %v925_v8 = vadd.f32 %v924_v2, %v2264_v57  ;;  %v973_v9 = vadd.f32 %v972_v7, %v2264_v57 }
 0x293   : > { %v928_v10 = vpop.f32.mrf.mxu0  ;;  %v976_v11 = vpop.f32.mrf.mxu1 }
 0x294   : > { %1014 = vst [vmem:[%s2099_s24 + $0x18] sm:$0xff] %v925_v8  ;;  %1030 = vst [vmem:[%s2099_s24 + $0x98] sm:$0xff] %v973_v9  ;;  %v929_v12 = vadd.f32 %v928_v10, %v2262_v56  ;;  %v977_v13 = vadd.f32 %v976_v11, %v2262_v56 }
 0x295   : > { %v930_v14 = vpop.f32.mrf.mxu0  ;;  %v978_v15 = vpop.f32.mrf.mxu1 }
 0x296   : > { %1015 = vst [vmem:[%s2099_s24 + $0x20] sm:$0xff] %v929_v12  ;;  %1031 = vst [vmem:[%s2099_s24 + $0xa0] sm:$0xff] %v977_v13  ;;  %v931_v16 = vadd.f32 %v930_v14, %v2264_v57  ;;  %v979_v17 = vadd.f32 %v978_v15, %v2264_v57 }
 0x297   : > { %v934_v18 = vpop.f32.mrf.mxu0  ;;  %v982_v19 = vpop.f32.mrf.mxu1 }
 0x298   : > { %1016 = vst [vmem:[%s2099_s24 + $0x28] sm:$0xff] %v931_v16  ;;  %1032 = vst [vmem:[%s2099_s24 + $0xa8] sm:$0xff] %v979_v17  ;;  %v935_v20 = vadd.f32 %v934_v18, %v2262_v56  ;;  %v983_v21 = vadd.f32 %v982_v19, %v2262_v56 }
 0x299   : > { %v936_v22 = vpop.f32.mrf.mxu0  ;;  %v984_v23 = vpop.f32.mrf.mxu1 }
 0x29a   : > { %1017 = vst [vmem:[%s2099_s24 + $0x30] sm:$0xff] %v935_v20  ;;  %1033 = vst [vmem:[%s2099_s24 + $0xb0] sm:$0xff] %v983_v21  ;;  %v937_v24 = vadd.f32 %v936_v22, %v2264_v57  ;;  %v985_v25 = vadd.f32 %v984_v23, %v2264_v57 }
 0x29b   : > { %v940_v26 = vpop.f32.mrf.mxu0  ;;  %v988_v27 = vpop.f32.mrf.mxu1 }
 0x29c   : > { %1018 = vst [vmem:[%s2099_s24 + $0x38] sm:$0xff] %v937_v24  ;;  %1034 = vst [vmem:[%s2099_s24 + $0xb8] sm:$0xff] %v985_v25  ;;  %v941_v28 = vadd.f32 %v940_v26, %v2262_v56  ;;  %v989_v29 = vadd.f32 %v988_v27, %v2262_v56 }
 0x29d   : > { %v942_v30 = vpop.f32.mrf.mxu0  ;;  %v990_v31 = vpop.f32.mrf.mxu1 }
 0x29e   : > { %1019 = vst [vmem:[%s2099_s24 + $0x40] sm:$0xff] %v941_v28  ;;  %1035 = vst [vmem:[%s2099_s24 + $0xc0] sm:$0xff] %v989_v29  ;;  %v943_v32 = vadd.f32 %v942_v30, %v2264_v57  ;;  %v991_v33 = vadd.f32 %v990_v31, %v2264_v57 }
 0x29f   : > { %v946_v34 = vpop.f32.mrf.mxu0  ;;  %v994_v35 = vpop.f32.mrf.mxu1 }
 0x2a0   : > { %1020 = vst [vmem:[%s2099_s24 + $0x48] sm:$0xff] %v943_v32  ;;  %1036 = vst [vmem:[%s2099_s24 + $0xc8] sm:$0xff] %v991_v33  ;;  %v947_v36 = vadd.f32 %v946_v34, %v2262_v56  ;;  %v995_v37 = vadd.f32 %v994_v35, %v2262_v56 }
 0x2a1   : > { %v948_v38 = vpop.f32.mrf.mxu0  ;;  %v996_v39 = vpop.f32.mrf.mxu1 }
 0x2a2   : > { %1021 = vst [vmem:[%s2099_s24 + $0x50] sm:$0xff] %v947_v36  ;;  %1037 = vst [vmem:[%s2099_s24 + $0xd0] sm:$0xff] %v995_v37  ;;  %v949_v40 = vadd.f32 %v948_v38, %v2264_v57  ;;  %v997_v41 = vadd.f32 %v996_v39, %v2264_v57 }
 0x2a3   : > { %v952_v42 = vpop.f32.mrf.mxu0  ;;  %v1000_v43 = vpop.f32.mrf.mxu1 }
 0x2a4   : > { %1022 = vst [vmem:[%s2099_s24 + $0x58] sm:$0xff] %v949_v40  ;;  %1038 = vst [vmem:[%s2099_s24 + $0xd8] sm:$0xff] %v997_v41  ;;  %v953_v44 = vadd.f32 %v952_v42, %v2262_v56  ;;  %v1001_v45 = vadd.f32 %v1000_v43, %v2262_v56 }
 0x2a5   : > { %v954_v46 = vpop.f32.mrf.mxu0  ;;  %v1002_v47 = vpop.f32.mrf.mxu1 }
 0x2a6   : > { %1023 = vst [vmem:[%s2099_s24 + $0x60] sm:$0xff] %v953_v44  ;;  %1039 = vst [vmem:[%s2099_s24 + $0xe0] sm:$0xff] %v1001_v45  ;;  %v955_v48 = vadd.f32 %v954_v46, %v2264_v57  ;;  %v1003_v49 = vadd.f32 %v1002_v47, %v2264_v57 }
 0x2a7   : > { %v958_v50 = vpop.f32.mrf.mxu0  ;;  %v1006_v51 = vpop.f32.mrf.mxu1 }
 0x2a8   : > { %1024 = vst [vmem:[%s2099_s24 + $0x68] sm:$0xff] %v955_v48  ;;  %1040 = vst [vmem:[%s2099_s24 + $0xe8] sm:$0xff] %v1003_v49  ;;  %v959_v52 = vadd.f32 %v958_v50, %v2262_v56  ;;  %v1007_v53 = vadd.f32 %v1006_v51, %v2262_v56 }
 0x2a9   : > { %v960_v54 = vpop.f32.mrf.mxu0  ;;  %v1008_v55 = vpop.f32.mrf.mxu1 }
 0x2aa   : > { %1025 = vst [vmem:[%s2099_s24 + $0x70] sm:$0xff] %v959_v52  ;;  %1041 = vst [vmem:[%s2099_s24 + $0xf0] sm:$0xff] %v1007_v53  ;;  %v961_v58 = vadd.f32 %v960_v54, %v2264_v57  ;;  %v1009_v59 = vadd.f32 %v1008_v55, %v2264_v57 }
 0x2ac   : > { %1026 = vst [vmem:[%s2099_s24 + $0x78] sm:$0xff] %v961_v58  ;;  %1042 = vst [vmem:[%s2099_s24 + $0xf8] sm:$0xff] %v1009_v59 }
 0x2ad   : > { %1662 = shalt.err (!%p1659_p9)
}
 0x2ae   : > { %s1663_s15 = scalar_lea.hbm %s2330_s1, 4096  ;;  %s1667_s23 = scalar_lea.hbm %s2478_s13, 16384 }
 0x2af   : > { %p1664_p3 = scmp.ne.s32.totalorder %s2330_s1, %s1663_s15  ;;  %p1668_p11 = scmp.lt.s32.totalorder %s2330_s1, %s2478_s13 }
 0x2b0   : > { %p1669_p10 = scmp.lt.s32.totalorder %s1667_s23, %s1663_s15 }
 0x2b1   : > { %p1665_p6 = pnand %p1664_p3, %p2479_p1 }
 0x2b2   : > { %p1670_p12 = por %p1669_p10, %p1668_p11 }
 0x2b3   : > { %p1666_p8 = pneg %p1665_p6 }
 0x2b5   : > { %p1671_p2 = pnand %p1670_p12, %p1666_p8 }
 0x2b7   : > { %1674 = shalt.err (!%p1671_p2)
}
 0x2b8   : > { %s1814_s28 = smov 256   ;;  %s1815_s5 = smov 512  }
 0x2b9   : > { %s1816_s17 = smov 16  }
 0x2ba   : > { %1423 = dma.vmem_to_hbm [thread:$0]  (%p2479_p1), %s2332_s9, 4096, %s2330_s1, %s2342_s16, %s1814_s28, %s1815_s5, %s1816_s17  }
 0x2bb PF: > { %s2480_s2 = sld [smem:[#allocation25_spill]]  ;;  %p1443_p0 = scmp.ge.s32.totalorder %s1801_s6, 2 }
 0x2bc   : > { %s1075_s12 = sand.u32 1, %s1749_s18  }
 0x2bd   : > { %s1076_s21 = scalar_lea.sflag [#allocation5], %s1075_s12 }
 0x2c1   : > { %p2481_p7 = scmp.ne.s32.totalorder %s2480_s2, 0 }
 0x2c3   : > { %p1437_p5 = pnand %p1443_p0, %p2481_p7 }
 0x2c5   : > { %p1438_p4 = pneg %p1437_p5 }
 0x2c7   : > { %1744 = dma.done.wait (%p1438_p4), %s1076_s21, 4096  }
 0x2c8   : > { %1746 = vsyncadd (%p1438_p4), %s1076_s21, 4294963200  ;;  %s22_s6 = sadd.s32 1, %s1801_s6   ;;  %s2483_s14 = sld [smem:[#allocation14_spill]] }
 0x2c9   : > { %p2370_p13 = scmp.ge.s32.totalorder %s22_s6, 6   ;;  %s2484_s20 = sld [smem:[#allocation22_spill]] }
 0x2ca   : > { %s2485_s9 = sld [smem:[#allocation15_spill]]  ;;  %s2492_s18 = smov %s1753_s19 }
 0x2cb   : > { %s2486_s23 = sld [smem:[#allocation24_spill]]  ;;  %s2494_s21 = smov %s1765_s22 }
 0x2cc   : > { %s2487_s8 = sld [smem:[#allocation16_spill]]  ;;  %s2496_s24 = smov %s1777_s25 }
 0x2cd   : > { %s2488_s26 = sld [smem:[#allocation23_spill]]  ;;  %s2498_s28 = smov %s1797_s30 }
 0x2ce   : > { %s2489_s27 = sld [smem:[#allocation19_spill]]  ;;  %s2493_s19 = smov %s2483_s14 }
 0x2cf   : > { %s2490_s29 = sld [smem:[#allocation20_spill]] }
 0x2d0   : > { %s2491_s3 = sld [smem:[#allocation21_spill]]  ;;  %s2495_s22 = smov %s2485_s9 }
 0x2d2   : > { %s2497_s25 = smov %s2487_s8  ;;  %21 = sbr.rel (!%p2370_p13) target bundleno = 18 (0x12), region = 109 }
 0x2d6   : > { %s2499_s30 = smov %s2491_s3 }
 0x2d7   :  { %1081 = vsyncpa [#allocation4], 1 }
 0x2d8   :  { %1083 = vsyncpa [#allocation4 + $0x1], 1 }
 0x2d9   :  { %1084 = vsyncpa [#allocation7], 1 }
 0x2da   :  { %1085 = vsyncpa [#allocation5], 1 }
 0x2db   :  { %1087 = vsyncpa [#allocation5 + $0x1], 1 }

</bundles_post_ra>
